<compile_context>
chip_gen: v6e
topology: v6e:2x2x1
jax: 0.10.0
libtpu: 0.0.40
codegen_flags: <defaults>
</compile_context>

<pallas_src>
import functools
import math

import jax
import jax.numpy as jnp
from jax.experimental import pallas as pl
from jax.experimental.pallas import tpu as pltpu


# ------------------------- fused AmplitudeEstimator kernel -------------------------


def _estimator_kernel(a_ref, phi_ref, bias_ref, iscale_ref,
                      wA_ref, bA_ref, w1A_ref, b1A_ref, w2A_ref, b2A_ref,
                      wP_ref, bP_ref, w1P_ref, b1P_ref, w2P_ref, b2P_ref,
                      wF_ref, bF_ref, resh_ref, out_ref,
                      *, cf, tt, P, compute_dtype):
    """One (batch*channel, time-tile) step of the fused AmplitudeEstimator."""
    K = 2 * cf + 1
    ti = pl.program_id(1)

    def mm(x, w):  # MXU matmul with f32 accumulation
        return jnp.dot(x.astype(compute_dtype), w.astype(compute_dtype),
                       preferred_element_type=jnp.float32)

    fbias = bias_ref[...]      # (1, F) BiasLayer bias (reused for the final add)
    w_fin = wF_ref[...]        # (H, F) fc_final weight shared by all branches
    b_fin = bF_ref[...]        # (1, F)

    def head(acc, b0_ref, w1_ref, b1_ref, w2_ref, b2_ref):
        # conv bias + ReLU -> two Linear(H,H)+ReLU -> fc_final(H,F)+ReLU, all in VMEM.
        h = jnp.maximum(acc + b0_ref[...], 0.0)
        h = jnp.maximum(mm(h, w1_ref[...]) + b1_ref[...], 0.0)
        h = jnp.maximum(mm(h, w2_ref[...]) + b2_ref[...], 0.0)
        return jnp.maximum(mm(h, w_fin) + b_fin, 0.0)                 # (tt, F)

    # ---- amplitude branch: BiasLayer(norm, rescale) + reflection-padded time conv + fc_A
    start = pl.multiple_of(ti * tt, tt)
    win = a_ref[0, pl.ds(start, tt + 2 * cf), :]                      # (tt + 2cf, F)
    win = (win - fbias) * iscale_ref[...]                             # (x - b) * (1/s)
    acc = mm(win[0:tt, :], wA_ref[0])
    for k in range(1, K):                                             # K shifted matmuls, no im2col
        acc = acc + mm(win[k:k + tt, :], wA_ref[k])
    out = head(acc, bA_ref, w1A_ref, b1A_ref, w2A_ref, b2A_ref) * resh_ref[0]

    # ---- phase branches: Conv3d(F->H, (K,1,1)) runs along the P axis with zero padding
    for p in range(P):
        acc = None
        for q in range(P):
            k = q + cf - p
            if 0 <= k < K:
                term = mm(phi_ref[0, q, :, :], wP_ref[k])
                acc = term if acc is None else acc + term
        if acc is None:                                               # whole window in the zero pad
            acc = jnp.zeros((tt, w1P_ref.shape[0]), jnp.float32)
        out = out + head(acc, bP_ref, w1P_ref, b1P_ref, w2P_ref, b2P_ref) * resh_ref[1 + p]

    # ---- "reshape" Linear(P+1, 1) bias + final BiasLayer(norm=False): + bias
    out_ref[0, :, :] = out + resh_ref[P + 1] + fbias


def estimator_forward_pallas(params, amplitude, phase_features, *, context_frames,
                             tt=None, compute_dtype=jnp.float32):
    """amplitude: (B, C, T, F); phase_features: (B, C, P, T, F) (layout produced by DNN)."""
    B, C, T, F = amplitude.shape
    P = phase_features.shape[2]
    assert phase_features.shape == (B, C, P, T, F)
    cf = context_frames
    K = 2 * cf + 1
    H = params["fcA_w1"].shape[0]
    BC = B * C

    if tt is None:
        tt = T
        for cand in (512, 256, 128, 64, 32, 16, 8):
            if T % cand == 0:
                tt = cand
                break
    assert T % tt == 0 and (tt % 8 == 0 or tt == T), (T, tt)
    nT = T // tt

    # Reflection pad (PyTorch ReflectionPad2d semantics) over time, done once in HBM
    # (only 2*cf extra rows); the per-frequency BiasLayer normalization commutes with
    # it and is applied inside the kernel.
    refl = jnp.asarray(
        list(range(cf, 0, -1)) + list(range(T)) + list(range(T - 2, T - 2 - cf, -1)),
        dtype=jnp.int32)
    a_pad = amplitude.reshape(BC, T, F)[:, refl, :]                   # (BC, T + 2cf, F)
    phi = phase_features.reshape(BC, P, T, F)

    f32 = jnp.float32
    bias2d = params["bias"].reshape(1, F).astype(f32)
    iscale2d = (1.0 / params["scale"]).reshape(1, F).astype(f32)      # reciprocal precomputed
    wA = params["convA_w"].astype(compute_dtype)
    bA = params["convA_b"].reshape(1, H).astype(f32)
    w1A = params["fcA_w1"].astype(compute_dtype)
    b1A = params["fcA_b1"].reshape(1, H).astype(f32)
    w2A = params["fcA_w2"].astype(compute_dtype)
    b2A = params["fcA_b2"].reshape(1, H).astype(f32)
    wP = params["convP_w"].astype(compute_dtype)
    bP = params["convP_b"].reshape(1, H).astype(f32)
    w1P = params["fcP_w1"].astype(compute_dtype)
    b1P = params["fcP_b1"].reshape(1, H).astype(f32)
    w2P = params["fcP_w2"].astype(compute_dtype)
    b2P = params["fcP_b2"].reshape(1, H).astype(f32)
    wF = params["fcF_w"].astype(compute_dtype)
    bF = params["fcF_b"].reshape(1, F).astype(f32)
    resh = jnp.concatenate(
        [params["resh_w"].reshape(P + 1), params["resh_b"].reshape(1)]).astype(f32)

    consts = (bias2d, iscale2d, wA, bA, w1A, b1A, w2A, b2A,
              wP, bP, w1P, b1P, w2P, b2P, wF, bF, resh)

    def _wspec(shape):
        return pl.BlockSpec(shape, lambda bc, ti: (0,) * len(shape))

    in_specs = [
        pl.BlockSpec((1, T + 2 * cf, F), lambda bc, ti: (bc, 0, 0)),   # padded amplitude (per bc)
        pl.BlockSpec((1, P, tt, F), lambda bc, ti: (bc, 0, ti, 0)),    # phase features (time-tiled)
        _wspec((1, F)), _wspec((1, F)),                                # bias, 1/scale
        _wspec((K, F, H)), _wspec((1, H)),                             # conv_A
        _wspec((H, H)), _wspec((1, H)), _wspec((H, H)), _wspec((1, H)),  # fc_A
        _wspec((K, F, H)), _wspec((1, H)),                             # conv_phi
        _wspec((H, H)), _wspec((1, H)), _wspec((H, H)), _wspec((1, H)),  # fc_phi
        _wspec((H, F)), _wspec((1, F)),                                # fc_final
        pl.BlockSpec(memory_space=pltpu.MemorySpace.SMEM),             # Linear(P+1,1) scalars
    ]
    out_spec = pl.BlockSpec((1, tt, F), lambda bc, ti: (bc, ti, 0))

    flops_per_row = ((2 * K * F * H + 4 * H * H + 2 * H * F)
                     + P * (2 * P * F * H + 4 * H * H + 2 * H * F))
    n_const = sum(int(c.size) for c in consts)
    cost = pl.CostEstimate(
        flops=int(BC * T * flops_per_row),
        transcendentals=0,
        bytes_accessed=int(4 * (a_pad.size + phi.size + BC * T * F + n_const)))

    kernel = functools.partial(_estimator_kernel, cf=cf, tt=tt, P=P,
                               compute_dtype=compute_dtype)
    out = pl.pallas_call(
        kernel,
        out_shape=jax.ShapeDtypeStruct((BC, T, F), f32),
        grid=(BC, nT),
        in_specs=in_specs,
        out_specs=out_spec,
        compiler_params=pltpu.CompilerParams(
            dimension_semantics=("parallel", "parallel"),
            vmem_limit_bytes=32 * 1024 * 1024),
        cost_estimate=cost,
    )(a_pad, phi, *consts)
    return out.reshape(B, C, T, F)


# ------------------------------ jnp reference estimator ----------------------------


def estimator_reference(params, amplitude, phase_features, *, context_frames):
    B, C, T, F = amplitude.shape
    P = phase_features.shape[2]
    cf = context_frames
    K = 2 * cf + 1
    relu = lambda v: jnp.maximum(v, 0.0)

    A0 = (amplitude - params["bias"]) / params["scale"]
    refl = jnp.asarray(
        list(range(cf, 0, -1)) + list(range(T)) + list(range(T - 2, T - 2 - cf, -1)),
        dtype=jnp.int32)
    A_pad = A0[:, :, refl, :]                                          # (B,C,T+2cf,F)
    wA = params["convA_w"]
    A_conv = sum(jnp.einsum("bctf,fh->bcth", A_pad[:, :, k:k + T, :], wA[k]) for k in range(K))
    A_feat = relu(A_conv + params["convA_b"])
    A_feat = relu(A_feat @ params["fcA_w1"] + params["fcA_b1"])
    A_feat = relu(A_feat @ params["fcA_w2"] + params["fcA_b2"])        # (B,C,T,H)

    Ph_pad = jnp.pad(phase_features, ((0, 0), (0, 0), (cf, cf), (0, 0), (0, 0)))
    wP = params["convP_w"]
    P_conv = sum(jnp.einsum("bcptf,fh->bcpth", Ph_pad[:, :, k:k + P, :, :], wP[k]) for k in range(K))
    P_feat = relu(P_conv + params["convP_b"])
    P_feat = relu(P_feat @ params["fcP_w1"] + params["fcP_b1"])
    P_feat = relu(P_feat @ params["fcP_w2"] + params["fcP_b2"])        # (B,C,P,T,H)

    feats = jnp.concatenate([A_feat[:, :, None, :, :], P_feat], axis=2)  # (B,C,P+1,T,H)
    feats = relu(feats @ params["fcF_w"] + params["fcF_b"])              # (B,C,P+1,T,F)
    out = jnp.einsum("bcjtf,j->bctf", feats, params["resh_w"]) + params["resh_b"]
    return out + params["bias"]                                          # (B,C,T,F)


# ------------------------------------ DNN front-end ---------------------------------


def _hann_window(n):  # periodic, matches torch.hann_window
    return 0.5 - 0.5 * jnp.cos(2.0 * math.pi * jnp.arange(n, dtype=jnp.float32) / n)


def _stft_mag_phase(x, n_fft, n_hop):
    # torch.stft(center=False, onesided=True, hann) returned already as (B, C, T, F).
    B, C, L = x.shape
    T = 1 + (L - n_fft) // n_hop
    idx = jnp.arange(T)[:, None] * n_hop + jnp.arange(n_fft)[None, :]
    frames = x.reshape(B * C, L)[:, idx] * _hann_window(n_fft)        # (BC, T, n_fft)
    spec = jnp.fft.rfft(frames, axis=-1).reshape(B, C, T, n_fft // 2 + 1)
    return jnp.abs(spec), jnp.angle(spec)


def _derivative(x, axis):
    axis = axis % x.ndim
    dx = jnp.diff(x, axis=axis)
    last = jax.lax.slice_in_dim(dx, dx.shape[axis] - 1, dx.shape[axis], axis=axis)
    return jnp.concatenate([dx, last], axis=axis)


def _compute_phase_features(phi, n_fft, n_hop):
    F = n_fft // 2 + 1
    phase_shift = 2.0 * math.pi * n_hop / n_fft * jnp.arange(F, dtype=jnp.float32)
    dt_phi = _derivative(phi, -2) - phase_shift
    df_phi = _derivative(phi, -1) - math.pi
    d_phi = jnp.stack([df_phi, dt_phi], axis=-3)                      # (B, C, 2, T, F)
    return (d_phi + math.pi) % (2.0 * math.pi) - math.pi


def dnn_forward(params, x, *, n_fft, n_hop, context_frames, tt=None, use_pallas=True):
    A, phi = _stft_mag_phase(x, n_fft, n_hop)
    feats = _compute_phase_features(phi, n_fft, n_hop)                # (B, C, 2, T, F)
    if use_pallas:
        A_hat = estimator_forward_pallas(params, A, feats,
                                         context_frames=context_frames, tt=tt)
    else:
        A_hat = estimator_reference(params, A, feats, context_frames=context_frames)
    phase = jnp.stack([jnp.cos(phi), jnp.sin(phi)], axis=-1)          # (B, C, T, F, 2)
    y = A_hat[..., None] * phase
    return jnp.swapaxes(y, -3, -2)                                    # (B, C, F, T, 2)


# -------------------------------------- params --------------------------------------


def init_params(key, F, H, K, P):
    ks = jax.random.split(key, 16)

    def w(k, shape, fan_in):
        return jax.random.normal(k, shape, jnp.float32) / math.sqrt(fan_in)

    return {
        "bias": 0.1 * jax.random.normal(ks[0], (F,), jnp.float32),
        "scale": 1.0 + 0.1 * jnp.abs(jax.random.normal(ks[1], (F,), jnp.float32)),
        "convA_w": w(ks[2], (K, F, H), K * F),
        "convA_b": 0.01 * jax.random.normal(ks[3], (H,), jnp.float32),
        "fcA_w1": w(ks[4], (H, H), H),
        "fcA_b1": 0.01 * jax.random.normal(ks[5], (H,), jnp.float32),
        "fcA_w2": w(ks[6], (H, H), H),
        "fcA_b2": 0.01 * jax.random.normal(ks[7], (H,), jnp.float32),
        "convP_w": w(ks[8], (K, F, H), K * F),
        "convP_b": 0.01 * jax.random.normal(ks[9], (H,), jnp.float32),
        "fcP_w1": w(ks[10], (H, H), H),
        "fcP_b1": 0.01 * jax.random.normal(ks[11], (H,), jnp.float32),
        "fcP_w2": w(ks[12], (H, H), H),
        "fcP_b2": 0.01 * jax.random.normal(ks[13], (H,), jnp.float32),
        "fcF_w": w(ks[14], (H, F), H),
        "fcF_b": jnp.zeros((F,), jnp.float32),
        "resh_w": w(ks[15], (P + 1,), P + 1),
        "resh_b": jnp.zeros((), jnp.float32),
    }


# --------------------------------------- main ---------------------------------------


if __name__ == "__main__":
    # Small-but-representative DNN config: n_fft=32 (F=17 bins), hop=16,
    # context_frames=2 (K=5), H=64 hidden, P=2 phase features (fixed by the model),
    # B=2, C=2 channels, L=272 samples -> T=16 STFT frames, time tile tt=8
    # -> Pallas grid (B*C, T//tt) = (4, 2).
    B, C, n_fft, n_hop, cf, H = 2, 2, 32, 16, 2, 64
    P = 2
    F = n_fft // 2 + 1
    L = n_fft + 15 * n_hop            # -> T = 16 frames
    T = 1 + (L - n_fft) // n_hop
    tt = 8

    key = jax.random.PRNGKey(0)
    kp, kx = jax.random.split(key)
    params = init_params(kp, F, H, 2 * cf + 1, P)
    x = jax.random.normal(kx, (B, C, L), jnp.float32)

    fwd = jax.jit(functools.partial(dnn_forward, n_fft=n_fft, n_hop=n_hop,
                                    context_frames=cf, tt=tt, use_pallas=True))
    ref_fwd = jax.jit(functools.partial(dnn_forward, n_fft=n_fft, n_hop=n_hop,
                                        context_frames=cf, tt=tt, use_pallas=False))

    out = jax.block_until_ready(fwd(params, x))
    ref = jax.block_until_ready(ref_fwd(params, x))

    assert out.shape == (B, C, F, T, 2), out.shape
    max_err = float(jnp.max(jnp.abs(out - ref)))
    assert max_err < 5e-4, f"Pallas estimator mismatch vs jnp reference: {max_err}"
    print("KERNEL_OK")
</pallas_src>

<mosaic_0001>
module attributes {stable_mosaic.version = 11 : i64} {
  func.func @_estimator_kernel(%arg0: i32, %arg1: i32, %arg2: memref<1x20x17xf32, #tpu.memory_space<vmem>>, %arg3: memref<1x2x8x17xf32, #tpu.memory_space<vmem>>, %arg4: memref<1x17xf32, #tpu.memory_space<vmem>>, %arg5: memref<1x17xf32, #tpu.memory_space<vmem>>, %arg6: memref<5x17x64xf32, #tpu.memory_space<vmem>>, %arg7: memref<1x64xf32, #tpu.memory_space<vmem>>, %arg8: memref<64x64xf32, #tpu.memory_space<vmem>>, %arg9: memref<1x64xf32, #tpu.memory_space<vmem>>, %arg10: memref<64x64xf32, #tpu.memory_space<vmem>>, %arg11: memref<1x64xf32, #tpu.memory_space<vmem>>, %arg12: memref<5x17x64xf32, #tpu.memory_space<vmem>>, %arg13: memref<1x64xf32, #tpu.memory_space<vmem>>, %arg14: memref<64x64xf32, #tpu.memory_space<vmem>>, %arg15: memref<1x64xf32, #tpu.memory_space<vmem>>, %arg16: memref<64x64xf32, #tpu.memory_space<vmem>>, %arg17: memref<1x64xf32, #tpu.memory_space<vmem>>, %arg18: memref<64x17xf32, #tpu.memory_space<vmem>>, %arg19: memref<1x17xf32, #tpu.memory_space<vmem>>, %arg20: memref<4xf32, #tpu.memory_space<smem>>, %arg21: memref<1x8x17xf32, #tpu.memory_space<vmem>>) attributes {dimension_semantics = [#tpu.dimension_semantics<parallel>, #tpu.dimension_semantics<parallel>], iteration_bounds = array<i64: 4, 2>, scalar_prefetch = 0 : i64, scratch_operands = 0 : i64, tpu.core_type = #tpu.core_type<tc>, window_params = [{transform_indices = @transform_0, window_bounds = array<i64: 1, 20, 17>}, {transform_indices = @transform_1, window_bounds = array<i64: 1, 2, 8, 17>}, {pipeline_mode = #tpu.pipeline_mode<synchronous>, transform_indices = @transform_2, window_bounds = array<i64: 1, 17>}, {pipeline_mode = #tpu.pipeline_mode<synchronous>, transform_indices = @transform_3, window_bounds = array<i64: 1, 17>}, {pipeline_mode = #tpu.pipeline_mode<synchronous>, transform_indices = @transform_4, window_bounds = array<i64: 5, 17, 64>}, {pipeline_mode = #tpu.pipeline_mode<synchronous>, transform_indices = @transform_5, window_bounds = array<i64: 1, 64>}, {pipeline_mode = #tpu.pipeline_mode<synchronous>, transform_indices = @transform_6, window_bounds = array<i64: 64, 64>}, {pipeline_mode = #tpu.pipeline_mode<synchronous>, transform_indices = @transform_7, window_bounds = array<i64: 1, 64>}, {pipeline_mode = #tpu.pipeline_mode<synchronous>, transform_indices = @transform_8, window_bounds = array<i64: 64, 64>}, {pipeline_mode = #tpu.pipeline_mode<synchronous>, transform_indices = @transform_9, window_bounds = array<i64: 1, 64>}, {pipeline_mode = #tpu.pipeline_mode<synchronous>, transform_indices = @transform_10, window_bounds = array<i64: 5, 17, 64>}, {pipeline_mode = #tpu.pipeline_mode<synchronous>, transform_indices = @transform_11, window_bounds = array<i64: 1, 64>}, {pipeline_mode = #tpu.pipeline_mode<synchronous>, transform_indices = @transform_12, window_bounds = array<i64: 64, 64>}, {pipeline_mode = #tpu.pipeline_mode<synchronous>, transform_indices = @transform_13, window_bounds = array<i64: 1, 64>}, {pipeline_mode = #tpu.pipeline_mode<synchronous>, transform_indices = @transform_14, window_bounds = array<i64: 64, 64>}, {pipeline_mode = #tpu.pipeline_mode<synchronous>, transform_indices = @transform_15, window_bounds = array<i64: 1, 64>}, {pipeline_mode = #tpu.pipeline_mode<synchronous>, transform_indices = @transform_16, window_bounds = array<i64: 64, 17>}, {pipeline_mode = #tpu.pipeline_mode<synchronous>, transform_indices = @transform_17, window_bounds = array<i64: 1, 17>}, {transform_indices = @transform_18, window_bounds = array<i64: 4>}, {transform_indices = @transform_19, window_bounds = array<i64: 1, 8, 17>}]} {
    %c0 = arith.constant 0 : index
    %c0_0 = arith.constant 0 : index
    %0 = vector.load %arg4[%c0, %c0_0] : memref<1x17xf32, #tpu.memory_space<vmem>>, vector<1x17xf32>
    %c0_1 = arith.constant 0 : index
    %c0_2 = arith.constant 0 : index
    %1 = vector.load %arg18[%c0_1, %c0_2] : memref<64x17xf32, #tpu.memory_space<vmem>>, vector<64x17xf32>
    %c0_3 = arith.constant 0 : index
    %c0_4 = arith.constant 0 : index
    %2 = vector.load %arg19[%c0_3, %c0_4] : memref<1x17xf32, #tpu.memory_space<vmem>>, vector<1x17xf32>
    %c8_i32 = arith.constant 8 : i32
    %3 = arith.muli %arg1, %c8_i32 : i32
    %4 = tpu.assume_multiple %3, 8 : i32
    %c0_5 = arith.constant 0 : index
    %5 = arith.index_cast %4 : i32 to index
    %c0_6 = arith.constant 0 : index
    %6 = vector.load %arg2[%c0_5, %5, %c0_6] : memref<1x20x17xf32, #tpu.memory_space<vmem>>, vector<1x12x17xf32>
    %7 = vector.shape_cast %6 : vector<1x12x17xf32> to vector<12x17xf32>
    %8 = vector.broadcast %0 : vector<1x17xf32> to vector<12x17xf32>
    %9 = arith.subf %7, %8 : vector<12x17xf32>
    %c0_7 = arith.constant 0 : index
    %c0_8 = arith.constant 0 : index
    %10 = vector.load %arg5[%c0_7, %c0_8] : memref<1x17xf32, #tpu.memory_space<vmem>>, vector<1x17xf32>
    %11 = vector.broadcast %10 : vector<1x17xf32> to vector<12x17xf32>
    %12 = arith.mulf %9, %11 : vector<12x17xf32>
    %13 = vector.extract_strided_slice %12 {offsets = [0, 0], sizes = [8, 17], strides = [1, 1]} : vector<12x17xf32> to vector<8x17xf32>
    %c0_9 = arith.constant 0 : index
    %c0_10 = arith.constant 0 : index
    %c0_11 = arith.constant 0 : index
    %14 = vector.load %arg6[%c0_9, %c0_10, %c0_11] : memref<5x17x64xf32, #tpu.memory_space<vmem>>, vector<1x17x64xf32>
    %15 = vector.shape_cast %14 : vector<1x17x64xf32> to vector<17x64xf32>
    %cst = arith.constant dense<0.000000e+00> : vector<8x64xf32>
    %16 = tpu.matmul %13, %15, %cst {dimension_numbers = #tpu.dot_dimension_numbers<[1], [0], [0], [1], [0, 0, 1, 1], [], []>} : vector<8x17xf32>, vector<17x64xf32>, vector<8x64xf32> -> vector<8x64xf32>
    %17 = vector.extract_strided_slice %12 {offsets = [1, 0], sizes = [8, 17], strides = [1, 1]} : vector<12x17xf32> to vector<8x17xf32>
    %c1 = arith.constant 1 : index
    %c0_12 = arith.constant 0 : index
    %c0_13 = arith.constant 0 : index
    %18 = vector.load %arg6[%c1, %c0_12, %c0_13] : memref<5x17x64xf32, #tpu.memory_space<vmem>>, vector<1x17x64xf32>
    %19 = vector.shape_cast %18 : vector<1x17x64xf32> to vector<17x64xf32>
    %cst_14 = arith.constant dense<0.000000e+00> : vector<8x64xf32>
    %20 = tpu.matmul %17, %19, %cst_14 {dimension_numbers = #tpu.dot_dimension_numbers<[1], [0], [0], [1], [0, 0, 1, 1], [], []>} : vector<8x17xf32>, vector<17x64xf32>, vector<8x64xf32> -> vector<8x64xf32>
    %21 = arith.addf %16, %20 : vector<8x64xf32>
    %22 = vector.extract_strided_slice %12 {offsets = [2, 0], sizes = [8, 17], strides = [1, 1]} : vector<12x17xf32> to vector<8x17xf32>
    %c2 = arith.constant 2 : index
    %c0_15 = arith.constant 0 : index
    %c0_16 = arith.constant 0 : index
    %23 = vector.load %arg6[%c2, %c0_15, %c0_16] : memref<5x17x64xf32, #tpu.memory_space<vmem>>, vector<1x17x64xf32>
    %24 = vector.shape_cast %23 : vector<1x17x64xf32> to vector<17x64xf32>
    %cst_17 = arith.constant dense<0.000000e+00> : vector<8x64xf32>
    %25 = tpu.matmul %22, %24, %cst_17 {dimension_numbers = #tpu.dot_dimension_numbers<[1], [0], [0], [1], [0, 0, 1, 1], [], []>} : vector<8x17xf32>, vector<17x64xf32>, vector<8x64xf32> -> vector<8x64xf32>
    %26 = arith.addf %21, %25 : vector<8x64xf32>
    %27 = vector.extract_strided_slice %12 {offsets = [3, 0], sizes = [8, 17], strides = [1, 1]} : vector<12x17xf32> to vector<8x17xf32>
    %c3 = arith.constant 3 : index
    %c0_18 = arith.constant 0 : index
    %c0_19 = arith.constant 0 : index
    %28 = vector.load %arg6[%c3, %c0_18, %c0_19] : memref<5x17x64xf32, #tpu.memory_space<vmem>>, vector<1x17x64xf32>
    %29 = vector.shape_cast %28 : vector<1x17x64xf32> to vector<17x64xf32>
    %cst_20 = arith.constant dense<0.000000e+00> : vector<8x64xf32>
    %30 = tpu.matmul %27, %29, %cst_20 {dimension_numbers = #tpu.dot_dimension_numbers<[1], [0], [0], [1], [0, 0, 1, 1], [], []>} : vector<8x17xf32>, vector<17x64xf32>, vector<8x64xf32> -> vector<8x64xf32>
    %31 = arith.addf %26, %30 : vector<8x64xf32>
    %32 = vector.extract_strided_slice %12 {offsets = [4, 0], sizes = [8, 17], strides = [1, 1]} : vector<12x17xf32> to vector<8x17xf32>
    %c4 = arith.constant 4 : index
    %c0_21 = arith.constant 0 : index
    %c0_22 = arith.constant 0 : index
    %33 = vector.load %arg6[%c4, %c0_21, %c0_22] : memref<5x17x64xf32, #tpu.memory_space<vmem>>, vector<1x17x64xf32>
    %34 = vector.shape_cast %33 : vector<1x17x64xf32> to vector<17x64xf32>
    %cst_23 = arith.constant dense<0.000000e+00> : vector<8x64xf32>
    %35 = tpu.matmul %32, %34, %cst_23 {dimension_numbers = #tpu.dot_dimension_numbers<[1], [0], [0], [1], [0, 0, 1, 1], [], []>} : vector<8x17xf32>, vector<17x64xf32>, vector<8x64xf32> -> vector<8x64xf32>
    %36 = arith.addf %31, %35 : vector<8x64xf32>
    %c0_24 = arith.constant 0 : index
    %c0_25 = arith.constant 0 : index
    %37 = vector.load %arg7[%c0_24, %c0_25] : memref<1x64xf32, #tpu.memory_space<vmem>>, vector<1x64xf32>
    %38 = vector.broadcast %37 : vector<1x64xf32> to vector<8x64xf32>
    %39 = arith.addf %36, %38 : vector<8x64xf32>
    %cst_26 = arith.constant 0.000000e+00 : f32
    %40 = vector.broadcast %cst_26 : f32 to vector<8x64xf32>
    %41 = arith.maximumf %39, %40 : vector<8x64xf32>
    %c0_27 = arith.constant 0 : index
    %c0_28 = arith.constant 0 : index
    %42 = vector.load %arg8[%c0_27, %c0_28] : memref<64x64xf32, #tpu.memory_space<vmem>>, vector<64x64xf32>
    %cst_29 = arith.constant dense<0.000000e+00> : vector<8x64xf32>
    %43 = tpu.matmul %41, %42, %cst_29 {dimension_numbers = #tpu.dot_dimension_numbers<[1], [0], [0], [1], [0, 0, 1, 1], [], []>} : vector<8x64xf32>, vector<64x64xf32>, vector<8x64xf32> -> vector<8x64xf32>
    %c0_30 = arith.constant 0 : index
    %c0_31 = arith.constant 0 : index
    %44 = vector.load %arg9[%c0_30, %c0_31] : memref<1x64xf32, #tpu.memory_space<vmem>>, vector<1x64xf32>
    %45 = vector.broadcast %44 : vector<1x64xf32> to vector<8x64xf32>
    %46 = arith.addf %43, %45 : vector<8x64xf32>
    %cst_32 = arith.constant 0.000000e+00 : f32
    %47 = vector.broadcast %cst_32 : f32 to vector<8x64xf32>
    %48 = arith.maximumf %46, %47 : vector<8x64xf32>
    %c0_33 = arith.constant 0 : index
    %c0_34 = arith.constant 0 : index
    %49 = vector.load %arg10[%c0_33, %c0_34] : memref<64x64xf32, #tpu.memory_space<vmem>>, vector<64x64xf32>
    %cst_35 = arith.constant dense<0.000000e+00> : vector<8x64xf32>
    %50 = tpu.matmul %48, %49, %cst_35 {dimension_numbers = #tpu.dot_dimension_numbers<[1], [0], [0], [1], [0, 0, 1, 1], [], []>} : vector<8x64xf32>, vector<64x64xf32>, vector<8x64xf32> -> vector<8x64xf32>
    %c0_36 = arith.constant 0 : index
    %c0_37 = arith.constant 0 : index
    %51 = vector.load %arg11[%c0_36, %c0_37] : memref<1x64xf32, #tpu.memory_space<vmem>>, vector<1x64xf32>
    %52 = vector.broadcast %51 : vector<1x64xf32> to vector<8x64xf32>
    %53 = arith.addf %50, %52 : vector<8x64xf32>
    %cst_38 = arith.constant 0.000000e+00 : f32
    %54 = vector.broadcast %cst_38 : f32 to vector<8x64xf32>
    %55 = arith.maximumf %53, %54 : vector<8x64xf32>
    %cst_39 = arith.constant dense<0.000000e+00> : vector<8x17xf32>
    %56 = tpu.matmul %55, %1, %cst_39 {dimension_numbers = #tpu.dot_dimension_numbers<[1], [0], [0], [1], [0, 0, 1, 1], [], []>} : vector<8x64xf32>, vector<64x17xf32>, vector<8x17xf32> -> vector<8x17xf32>
    %57 = vector.broadcast %2 : vector<1x17xf32> to vector<8x17xf32>
    %58 = arith.addf %56, %57 : vector<8x17xf32>
    %cst_40 = arith.constant 0.000000e+00 : f32
    %59 = vector.broadcast %cst_40 : f32 to vector<8x17xf32>
    %60 = arith.maximumf %58, %59 : vector<8x17xf32>
    %c0_41 = arith.constant 0 : index
    %61 = memref.load %arg20[%c0_41] : memref<4xf32, #tpu.memory_space<smem>>
    %62 = vector.broadcast %61 : f32 to vector<8x17xf32>
    %63 = arith.mulf %60, %62 : vector<8x17xf32>
    %c0_42 = arith.constant 0 : index
    %c0_43 = arith.constant 0 : index
    %c0_44 = arith.constant 0 : index
    %c0_45 = arith.constant 0 : index
    %64 = vector.load %arg3[%c0_42, %c0_43, %c0_44, %c0_45] : memref<1x2x8x17xf32, #tpu.memory_space<vmem>>, vector<1x1x8x17xf32>
    %65 = vector.shape_cast %64 : vector<1x1x8x17xf32> to vector<8x17xf32>
    %c2_46 = arith.constant 2 : index
    %c0_47 = arith.constant 0 : index
    %c0_48 = arith.constant 0 : index
    %66 = vector.load %arg12[%c2_46, %c0_47, %c0_48] : memref<5x17x64xf32, #tpu.memory_space<vmem>>, vector<1x17x64xf32>
    %67 = vector.shape_cast %66 : vector<1x17x64xf32> to vector<17x64xf32>
    %cst_49 = arith.constant dense<0.000000e+00> : vector<8x64xf32>
    %68 = tpu.matmul %65, %67, %cst_49 {dimension_numbers = #tpu.dot_dimension_numbers<[1], [0], [0], [1], [0, 0, 1, 1], [], []>} : vector<8x17xf32>, vector<17x64xf32>, vector<8x64xf32> -> vector<8x64xf32>
    %c0_50 = arith.constant 0 : index
    %c1_51 = arith.constant 1 : index
    %c0_52 = arith.constant 0 : index
    %c0_53 = arith.constant 0 : index
    %69 = vector.load %arg3[%c0_50, %c1_51, %c0_52, %c0_53] : memref<1x2x8x17xf32, #tpu.memory_space<vmem>>, vector<1x1x8x17xf32>
    %70 = vector.shape_cast %69 : vector<1x1x8x17xf32> to vector<8x17xf32>
    %c3_54 = arith.constant 3 : index
    %c0_55 = arith.constant 0 : index
    %c0_56 = arith.constant 0 : index
    %71 = vector.load %arg12[%c3_54, %c0_55, %c0_56] : memref<5x17x64xf32, #tpu.memory_space<vmem>>, vector<1x17x64xf32>
    %72 = vector.shape_cast %71 : vector<1x17x64xf32> to vector<17x64xf32>
    %cst_57 = arith.constant dense<0.000000e+00> : vector<8x64xf32>
    %73 = tpu.matmul %70, %72, %cst_57 {dimension_numbers = #tpu.dot_dimension_numbers<[1], [0], [0], [1], [0, 0, 1, 1], [], []>} : vector<8x17xf32>, vector<17x64xf32>, vector<8x64xf32> -> vector<8x64xf32>
    %74 = arith.addf %68, %73 : vector<8x64xf32>
    %c0_58 = arith.constant 0 : index
    %c0_59 = arith.constant 0 : index
    %75 = vector.load %arg13[%c0_58, %c0_59] : memref<1x64xf32, #tpu.memory_space<vmem>>, vector<1x64xf32>
    %76 = vector.broadcast %75 : vector<1x64xf32> to vector<8x64xf32>
    %77 = arith.addf %74, %76 : vector<8x64xf32>
    %cst_60 = arith.constant 0.000000e+00 : f32
    %78 = vector.broadcast %cst_60 : f32 to vector<8x64xf32>
    %79 = arith.maximumf %77, %78 : vector<8x64xf32>
    %c0_61 = arith.constant 0 : index
    %c0_62 = arith.constant 0 : index
    %80 = vector.load %arg14[%c0_61, %c0_62] : memref<64x64xf32, #tpu.memory_space<vmem>>, vector<64x64xf32>
    %cst_63 = arith.constant dense<0.000000e+00> : vector<8x64xf32>
    %81 = tpu.matmul %79, %80, %cst_63 {dimension_numbers = #tpu.dot_dimension_numbers<[1], [0], [0], [1], [0, 0, 1, 1], [], []>} : vector<8x64xf32>, vector<64x64xf32>, vector<8x64xf32> -> vector<8x64xf32>
    %c0_64 = arith.constant 0 : index
    %c0_65 = arith.constant 0 : index
    %82 = vector.load %arg15[%c0_64, %c0_65] : memref<1x64xf32, #tpu.memory_space<vmem>>, vector<1x64xf32>
    %83 = vector.broadcast %82 : vector<1x64xf32> to vector<8x64xf32>
    %84 = arith.addf %81, %83 : vector<8x64xf32>
    %cst_66 = arith.constant 0.000000e+00 : f32
    %85 = vector.broadcast %cst_66 : f32 to vector<8x64xf32>
    %86 = arith.maximumf %84, %85 : vector<8x64xf32>
    %c0_67 = arith.constant 0 : index
    %c0_68 = arith.constant 0 : index
    %87 = vector.load %arg16[%c0_67, %c0_68] : memref<64x64xf32, #tpu.memory_space<vmem>>, vector<64x64xf32>
    %cst_69 = arith.constant dense<0.000000e+00> : vector<8x64xf32>
    %88 = tpu.matmul %86, %87, %cst_69 {dimension_numbers = #tpu.dot_dimension_numbers<[1], [0], [0], [1], [0, 0, 1, 1], [], []>} : vector<8x64xf32>, vector<64x64xf32>, vector<8x64xf32> -> vector<8x64xf32>
    %c0_70 = arith.constant 0 : index
    %c0_71 = arith.constant 0 : index
    %89 = vector.load %arg17[%c0_70, %c0_71] : memref<1x64xf32, #tpu.memory_space<vmem>>, vector<1x64xf32>
    %90 = vector.broadcast %89 : vector<1x64xf32> to vector<8x64xf32>
    %91 = arith.addf %88, %90 : vector<8x64xf32>
    %cst_72 = arith.constant 0.000000e+00 : f32
    %92 = vector.broadcast %cst_72 : f32 to vector<8x64xf32>
    %93 = arith.maximumf %91, %92 : vector<8x64xf32>
    %cst_73 = arith.constant dense<0.000000e+00> : vector<8x17xf32>
    %94 = tpu.matmul %93, %1, %cst_73 {dimension_numbers = #tpu.dot_dimension_numbers<[1], [0], [0], [1], [0, 0, 1, 1], [], []>} : vector<8x64xf32>, vector<64x17xf32>, vector<8x17xf32> -> vector<8x17xf32>
    %95 = vector.broadcast %2 : vector<1x17xf32> to vector<8x17xf32>
    %96 = arith.addf %94, %95 : vector<8x17xf32>
    %cst_74 = arith.constant 0.000000e+00 : f32
    %97 = vector.broadcast %cst_74 : f32 to vector<8x17xf32>
    %98 = arith.maximumf %96, %97 : vector<8x17xf32>
    %c1_75 = arith.constant 1 : index
    %99 = memref.load %arg20[%c1_75] : memref<4xf32, #tpu.memory_space<smem>>
    %100 = vector.broadcast %99 : f32 to vector<8x17xf32>
    %101 = arith.mulf %98, %100 : vector<8x17xf32>
    %102 = arith.addf %63, %101 : vector<8x17xf32>
    %c0_76 = arith.constant 0 : index
    %c0_77 = arith.constant 0 : index
    %c0_78 = arith.constant 0 : index
    %c0_79 = arith.constant 0 : index
    %103 = vector.load %arg3[%c0_76, %c0_77, %c0_78, %c0_79] : memref<1x2x8x17xf32, #tpu.memory_space<vmem>>, vector<1x1x8x17xf32>
    %104 = vector.shape_cast %103 : vector<1x1x8x17xf32> to vector<8x17xf32>
    %c1_80 = arith.constant 1 : index
    %c0_81 = arith.constant 0 : index
    %c0_82 = arith.constant 0 : index
    %105 = vector.load %arg12[%c1_80, %c0_81, %c0_82] : memref<5x17x64xf32, #tpu.memory_space<vmem>>, vector<1x17x64xf32>
    %106 = vector.shape_cast %105 : vector<1x17x64xf32> to vector<17x64xf32>
    %cst_83 = arith.constant dense<0.000000e+00> : vector<8x64xf32>
    %107 = tpu.matmul %104, %106, %cst_83 {dimension_numbers = #tpu.dot_dimension_numbers<[1], [0], [0], [1], [0, 0, 1, 1], [], []>} : vector<8x17xf32>, vector<17x64xf32>, vector<8x64xf32> -> vector<8x64xf32>
    %c0_84 = arith.constant 0 : index
    %c1_85 = arith.constant 1 : index
    %c0_86 = arith.constant 0 : index
    %c0_87 = arith.constant 0 : index
    %108 = vector.load %arg3[%c0_84, %c1_85, %c0_86, %c0_87] : memref<1x2x8x17xf32, #tpu.memory_space<vmem>>, vector<1x1x8x17xf32>
    %109 = vector.shape_cast %108 : vector<1x1x8x17xf32> to vector<8x17xf32>
    %c2_88 = arith.constant 2 : index
    %c0_89 = arith.constant 0 : index
    %c0_90 = arith.constant 0 : index
    %110 = vector.load %arg12[%c2_88, %c0_89, %c0_90] : memref<5x17x64xf32, #tpu.memory_space<vmem>>, vector<1x17x64xf32>
    %111 = vector.shape_cast %110 : vector<1x17x64xf32> to vector<17x64xf32>
    %cst_91 = arith.constant dense<0.000000e+00> : vector<8x64xf32>
    %112 = tpu.matmul %109, %111, %cst_91 {dimension_numbers = #tpu.dot_dimension_numbers<[1], [0], [0], [1], [0, 0, 1, 1], [], []>} : vector<8x17xf32>, vector<17x64xf32>, vector<8x64xf32> -> vector<8x64xf32>
    %113 = arith.addf %107, %112 : vector<8x64xf32>
    %c0_92 = arith.constant 0 : index
    %c0_93 = arith.constant 0 : index
    %114 = vector.load %arg13[%c0_92, %c0_93] : memref<1x64xf32, #tpu.memory_space<vmem>>, vector<1x64xf32>
    %115 = vector.broadcast %114 : vector<1x64xf32> to vector<8x64xf32>
    %116 = arith.addf %113, %115 : vector<8x64xf32>
    %cst_94 = arith.constant 0.000000e+00 : f32
    %117 = vector.broadcast %cst_94 : f32 to vector<8x64xf32>
    %118 = arith.maximumf %116, %117 : vector<8x64xf32>
    %c0_95 = arith.constant 0 : index
    %c0_96 = arith.constant 0 : index
    %119 = vector.load %arg14[%c0_95, %c0_96] : memref<64x64xf32, #tpu.memory_space<vmem>>, vector<64x64xf32>
    %cst_97 = arith.constant dense<0.000000e+00> : vector<8x64xf32>
    %120 = tpu.matmul %118, %119, %cst_97 {dimension_numbers = #tpu.dot_dimension_numbers<[1], [0], [0], [1], [0, 0, 1, 1], [], []>} : vector<8x64xf32>, vector<64x64xf32>, vector<8x64xf32> -> vector<8x64xf32>
    %c0_98 = arith.constant 0 : index
    %c0_99 = arith.constant 0 : index
    %121 = vector.load %arg15[%c0_98, %c0_99] : memref<1x64xf32, #tpu.memory_space<vmem>>, vector<1x64xf32>
    %122 = vector.broadcast %121 : vector<1x64xf32> to vector<8x64xf32>
    %123 = arith.addf %120, %122 : vector<8x64xf32>
    %cst_100 = arith.constant 0.000000e+00 : f32
    %124 = vector.broadcast %cst_100 : f32 to vector<8x64xf32>
    %125 = arith.maximumf %123, %124 : vector<8x64xf32>
    %c0_101 = arith.constant 0 : index
    %c0_102 = arith.constant 0 : index
    %126 = vector.load %arg16[%c0_101, %c0_102] : memref<64x64xf32, #tpu.memory_space<vmem>>, vector<64x64xf32>
    %cst_103 = arith.constant dense<0.000000e+00> : vector<8x64xf32>
    %127 = tpu.matmul %125, %126, %cst_103 {dimension_numbers = #tpu.dot_dimension_numbers<[1], [0], [0], [1], [0, 0, 1, 1], [], []>} : vector<8x64xf32>, vector<64x64xf32>, vector<8x64xf32> -> vector<8x64xf32>
    %c0_104 = arith.constant 0 : index
    %c0_105 = arith.constant 0 : index
    %128 = vector.load %arg17[%c0_104, %c0_105] : memref<1x64xf32, #tpu.memory_space<vmem>>, vector<1x64xf32>
    %129 = vector.broadcast %128 : vector<1x64xf32> to vector<8x64xf32>
    %130 = arith.addf %127, %129 : vector<8x64xf32>
    %cst_106 = arith.constant 0.000000e+00 : f32
    %131 = vector.broadcast %cst_106 : f32 to vector<8x64xf32>
    %132 = arith.maximumf %130, %131 : vector<8x64xf32>
    %cst_107 = arith.constant dense<0.000000e+00> : vector<8x17xf32>
    %133 = tpu.matmul %132, %1, %cst_107 {dimension_numbers = #tpu.dot_dimension_numbers<[1], [0], [0], [1], [0, 0, 1, 1], [], []>} : vector<8x64xf32>, vector<64x17xf32>, vector<8x17xf32> -> vector<8x17xf32>
    %134 = vector.broadcast %2 : vector<1x17xf32> to vector<8x17xf32>
    %135 = arith.addf %133, %134 : vector<8x17xf32>
    %cst_108 = arith.constant 0.000000e+00 : f32
    %136 = vector.broadcast %cst_108 : f32 to vector<8x17xf32>
    %137 = arith.maximumf %135, %136 : vector<8x17xf32>
    %c2_109 = arith.constant 2 : index
    %138 = memref.load %arg20[%c2_109] : memref<4xf32, #tpu.memory_space<smem>>
    %139 = vector.broadcast %138 : f32 to vector<8x17xf32>
    %140 = arith.mulf %137, %139 : vector<8x17xf32>
    %141 = arith.addf %102, %140 : vector<8x17xf32>
    %c3_110 = arith.constant 3 : index
    %142 = memref.load %arg20[%c3_110] : memref<4xf32, #tpu.memory_space<smem>>
    %143 = vector.broadcast %142 : f32 to vector<8x17xf32>
    %144 = arith.addf %141, %143 : vector<8x17xf32>
    %145 = vector.broadcast %0 : vector<1x17xf32> to vector<8x17xf32>
    %146 = arith.addf %144, %145 : vector<8x17xf32>
    %c0_111 = arith.constant 0 : index
    %c0_112 = arith.constant 0 : index
    %c0_113 = arith.constant 0 : index
    %147 = vector.load %arg21[%c0_111, %c0_112, %c0_113] : memref<1x8x17xf32, #tpu.memory_space<vmem>>, vector<1x8x17xf32>
    %148 = vector.shape_cast %147 : vector<1x8x17xf32> to vector<8x17xf32>
    %149 = vector.shape_cast %146 : vector<8x17xf32> to vector<1x8x17xf32>
    tpu.vector_store %arg21[%c0_111, %c0_112, %c0_113], %149 {strides = array<i32>} : memref<1x8x17xf32, #tpu.memory_space<vmem>>, vector<1x8x17xf32>,
    return
  }
  func.func @transform_0(%arg0: i32, %arg1: i32) -> (i32, i32, i32) {
    %c0_i32 = arith.constant 0 : i32
    %c0_i32_0 = arith.constant 0 : i32
    %c0_i32_1 = arith.constant 0 : i32
    return %arg0, %c0_i32, %c0_i32_0 : i32, i32, i32
  }
  func.func @transform_1(%arg0: i32, %arg1: i32) -> (i32, i32, i32, i32) {
    %c0_i32 = arith.constant 0 : i32
    %c0_i32_0 = arith.constant 0 : i32
    %c0_i32_1 = arith.constant 0 : i32
    return %arg0, %c0_i32, %arg1, %c0_i32_0 : i32, i32, i32, i32
  }
  func.func @transform_2(%arg0: i32, %arg1: i32) -> (i32, i32) {
    %c0_i32 = arith.constant 0 : i32
    %c0_i32_0 = arith.constant 0 : i32
    %c0_i32_1 = arith.constant 0 : i32
    return %c0_i32, %c0_i32_0 : i32, i32
  }
  func.func @transform_3(%arg0: i32, %arg1: i32) -> (i32, i32) {
    %c0_i32 = arith.constant 0 : i32
    %c0_i32_0 = arith.constant 0 : i32
    %c0_i32_1 = arith.constant 0 : i32
    return %c0_i32, %c0_i32_0 : i32, i32
  }
  func.func @transform_4(%arg0: i32, %arg1: i32) -> (i32, i32, i32) {
    %c0_i32 = arith.constant 0 : i32
    %c0_i32_0 = arith.constant 0 : i32
    %c0_i32_1 = arith.constant 0 : i32
    %c0_i32_2 = arith.constant 0 : i32
    return %c0_i32, %c0_i32_0, %c0_i32_1 : i32, i32, i32
  }
  func.func @transform_5(%arg0: i32, %arg1: i32) -> (i32, i32) {
    %c0_i32 = arith.constant 0 : i32
    %c0_i32_0 = arith.constant 0 : i32
    %c0_i32_1 = arith.constant 0 : i32
    return %c0_i32, %c0_i32_0 : i32, i32
  }
  func.func @transform_6(%arg0: i32, %arg1: i32) -> (i32, i32) {
    %c0_i32 = arith.constant 0 : i32
    %c0_i32_0 = arith.constant 0 : i32
    %c0_i32_1 = arith.constant 0 : i32
    return %c0_i32, %c0_i32_0 : i32, i32
  }
  func.func @transform_7(%arg0: i32, %arg1: i32) -> (i32, i32) {
    %c0_i32 = arith.constant 0 : i32
    %c0_i32_0 = arith.constant 0 : i32
    %c0_i32_1 = arith.constant 0 : i32
    return %c0_i32, %c0_i32_0 : i32, i32
  }
  func.func @transform_8(%arg0: i32, %arg1: i32) -> (i32, i32) {
    %c0_i32 = arith.constant 0 : i32
    %c0_i32_0 = arith.constant 0 : i32
    %c0_i32_1 = arith.constant 0 : i32
    return %c0_i32, %c0_i32_0 : i32, i32
  }
  func.func @transform_9(%arg0: i32, %arg1: i32) -> (i32, i32) {
    %c0_i32 = arith.constant 0 : i32
    %c0_i32_0 = arith.constant 0 : i32
    %c0_i32_1 = arith.constant 0 : i32
    return %c0_i32, %c0_i32_0 : i32, i32
  }
  func.func @transform_10(%arg0: i32, %arg1: i32) -> (i32, i32, i32) {
    %c0_i32 = arith.constant 0 : i32
    %c0_i32_0 = arith.constant 0 : i32
    %c0_i32_1 = arith.constant 0 : i32
    %c0_i32_2 = arith.constant 0 : i32
    return %c0_i32, %c0_i32_0, %c0_i32_1 : i32, i32, i32
  }
  func.func @transform_11(%arg0: i32, %arg1: i32) -> (i32, i32) {
    %c0_i32 = arith.constant 0 : i32
    %c0_i32_0 = arith.constant 0 : i32
    %c0_i32_1 = arith.constant 0 : i32
    return %c0_i32, %c0_i32_0 : i32, i32
  }
  func.func @transform_12(%arg0: i32, %arg1: i32) -> (i32, i32) {
    %c0_i32 = arith.constant 0 : i32
    %c0_i32_0 = arith.constant 0 : i32
    %c0_i32_1 = arith.constant 0 : i32
    return %c0_i32, %c0_i32_0 : i32, i32
  }
  func.func @transform_13(%arg0: i32, %arg1: i32) -> (i32, i32) {
    %c0_i32 = arith.constant 0 : i32
    %c0_i32_0 = arith.constant 0 : i32
    %c0_i32_1 = arith.constant 0 : i32
    return %c0_i32, %c0_i32_0 : i32, i32
  }
  func.func @transform_14(%arg0: i32, %arg1: i32) -> (i32, i32) {
    %c0_i32 = arith.constant 0 : i32
    %c0_i32_0 = arith.constant 0 : i32
    %c0_i32_1 = arith.constant 0 : i32
    return %c0_i32, %c0_i32_0 : i32, i32
  }
  func.func @transform_15(%arg0: i32, %arg1: i32) -> (i32, i32) {
    %c0_i32 = arith.constant 0 : i32
    %c0_i32_0 = arith.constant 0 : i32
    %c0_i32_1 = arith.constant 0 : i32
    return %c0_i32, %c0_i32_0 : i32, i32
  }
  func.func @transform_16(%arg0: i32, %arg1: i32) -> (i32, i32) {
    %c0_i32 = arith.constant 0 : i32
    %c0_i32_0 = arith.constant 0 : i32
    %c0_i32_1 = arith.constant 0 : i32
    return %c0_i32, %c0_i32_0 : i32, i32
  }
  func.func @transform_17(%arg0: i32, %arg1: i32) -> (i32, i32) {
    %c0_i32 = arith.constant 0 : i32
    %c0_i32_0 = arith.constant 0 : i32
    %c0_i32_1 = arith.constant 0 : i32
    return %c0_i32, %c0_i32_0 : i32, i32
  }
  func.func @transform_18(%arg0: i32, %arg1: i32) -> i32 {
    %c0_i32 = arith.constant 0 : i32
    %c0_i32_0 = arith.constant 0 : i32
    return %c0_i32 : i32
  }
  func.func @transform_19(%arg0: i32, %arg1: i32) -> (i32, i32, i32) {
    %c0_i32 = arith.constant 0 : i32
    %c0_i32_0 = arith.constant 0 : i32
    return %arg0, %arg1, %c0_i32 : i32, i32, i32
  }
}

</mosaic_0001>

<bundles_post_ra>
// kernel: sub.0
= control target key start
LH: loop header
LB: loop body
LE: loop exit
PB: predicated region body
PF: predicated region fallthrough
CT: control target
= control target key end

     0   :  { %s716_s0 = inlined_call_operand.vmem [shape: f32[2,2,16,16], index: 0, kind: input, shape index: {}]   ;;  %s717_s1 = inlined_call_operand.vmem [shape: f32[2,2,16,16], index: 1, kind: input, shape index: {}]   ;;  %s718_s2 = inlined_call_operand.vmem [shape: f32[2,2,16,16], index: 2, kind: output, shape index: {}]  }
   0x1   :  { %v3_v0 = vld [vmem:[%s716_s0] sm:$0x3]  ;;  %v320_v2 = vld [vmem:[%s716_s0 + $0x4] sm:$0x3]  ;;  %v323_v5 = vld [vmem:[%s716_s0 + $0x8] sm:$0x3] }
   0x2   :  { %v4_v1 = vld [vmem:[%s717_s1] sm:$0x3]  ;;  %v321_v4 = vld [vmem:[%s717_s1 + $0x4] sm:$0x3]  ;;  %v324_v6 = vld [vmem:[%s717_s1 + $0x8] sm:$0x3] }
   0x3   :  { %v7_v3 = vsub.f32 %v3_v0, %v4_v1  ;;  %v16_v7 = vsub.f32 %v320_v2, %v321_v4  ;;  %v26_v8 = vsub.f32 %v323_v5, %v324_v6  ;;  %v326_v9 = vld [vmem:[%s716_s0 + $0xc] sm:$0x3]  ;;  %v329_v11 = vld [vmem:[%s716_s0 + $0x10] sm:$0x3]  ;;  %v332_v14 = vld [vmem:[%s716_s0 + $0x14] sm:$0x3] }
   0x4   :  { %v327_v10 = vld [vmem:[%s717_s1 + $0xc] sm:$0x3]  ;;  %v330_v13 = vld [vmem:[%s717_s1 + $0x10] sm:$0x3]  ;;  %v333_v15 = vld [vmem:[%s717_s1 + $0x14] sm:$0x3] }
   0x5   :  { %9 = vst [vmem:[%s718_s2] sm:$0x3] %v7_v3  ;;  %v36_v12 = vsub.f32 %v326_v9, %v327_v10  ;;  %322 = vst [vmem:[%s718_s2 + $0x4] sm:$0x3] %v16_v7  ;;  %v46_v16 = vsub.f32 %v329_v11, %v330_v13  ;;  %v56_v17 = vsub.f32 %v332_v14, %v333_v15  ;;  %v335_v18 = vld [vmem:[%s716_s0 + $0x18] sm:$0x3] }
   0x6   :  { %325 = vst [vmem:[%s718_s2 + $0x8] sm:$0x3] %v26_v8  ;;  %v336_v19 = vld [vmem:[%s717_s1 + $0x18] sm:$0x3]  ;;  %v338_v20 = vld [vmem:[%s716_s0 + $0x1c] sm:$0x3] }
   0x7   :  { %328 = vst [vmem:[%s718_s2 + $0xc] sm:$0x3] %v36_v12  ;;  %v66_v21 = vsub.f32 %v335_v18, %v336_v19  ;;  %v339_v22 = vld [vmem:[%s717_s1 + $0x1c] sm:$0x3]  ;;  %v341_v23 = vld [vmem:[%s716_s0 + $0x20] sm:$0x3] }
   0x8   :  { %v342_v24 = vld [vmem:[%s717_s1 + $0x20] sm:$0x3]  ;;  %331 = vst [vmem:[%s718_s2 + $0x10] sm:$0x3] %v46_v16  ;;  %334 = vst [vmem:[%s718_s2 + $0x14] sm:$0x3] %v56_v17  ;;  %v76_v25 = vsub.f32 %v338_v20, %v339_v22 }
   0x9   :  { %v86_v26 = vsub.f32 %v341_v23, %v342_v24  ;;  %v344_v27 = vld [vmem:[%s716_s0 + $0x24] sm:$0x3]  ;;  %v347_v29 = vld [vmem:[%s716_s0 + $0x28] sm:$0x3]  ;;  %337 = vst [vmem:[%s718_s2 + $0x18] sm:$0x3] %v66_v21 }
   0xa   :  { %v345_v28 = vld [vmem:[%s717_s1 + $0x24] sm:$0x3]  ;;  %v348_v31 = vld [vmem:[%s717_s1 + $0x28] sm:$0x3]  ;;  %v350_v32 = vld [vmem:[%s716_s0 + $0x2c] sm:$0x3] }
   0xb   :  { %v96_v30 = vsub.f32 %v344_v27, %v345_v28  ;;  %v351_v33 = vld [vmem:[%s717_s1 + $0x2c] sm:$0x3]  ;;  %340 = vst [vmem:[%s718_s2 + $0x1c] sm:$0x3] %v76_v25  ;;  %343 = vst [vmem:[%s718_s2 + $0x20] sm:$0x3] %v86_v26  ;;  %v106_v34 = vsub.f32 %v347_v29, %v348_v31 }
   0xc   :  { %v116_v35 = vsub.f32 %v350_v32, %v351_v33  ;;  %v353_v36 = vld [vmem:[%s716_s0 + $0x30] sm:$0x3]  ;;  %v356_v38 = vld [vmem:[%s716_s0 + $0x34] sm:$0x3]  ;;  %v359_v41 = vld [vmem:[%s716_s0 + $0x38] sm:$0x3] }
   0xd   :  { %v354_v37 = vld [vmem:[%s717_s1 + $0x30] sm:$0x3]  ;;  %346 = vst [vmem:[%s718_s2 + $0x24] sm:$0x3] %v96_v30  ;;  %v357_v40 = vld [vmem:[%s717_s1 + $0x34] sm:$0x3] }
   0xe   :  { %v126_v39 = vsub.f32 %v353_v36, %v354_v37  ;;  %v360_v42 = vld [vmem:[%s717_s1 + $0x38] sm:$0x3]  ;;  %349 = vst [vmem:[%s718_s2 + $0x28] sm:$0x3] %v106_v34  ;;  %352 = vst [vmem:[%s718_s2 + $0x2c] sm:$0x3] %v116_v35  ;;  %v136_v43 = vsub.f32 %v356_v38, %v357_v40 }
   0xf   :  { %v146_v44 = vsub.f32 %v359_v41, %v360_v42  ;;  %v362_v45 = vld [vmem:[%s716_s0 + $0x3c] sm:$0x3]  ;;  %v365_v47 = vld [vmem:[%s716_s0 + $0x2] sm:$0x3]  ;;  %v368_v50 = vld [vmem:[%s716_s0 + $0x6] sm:$0x3] }
  0x10   :  { %v363_v46 = vld [vmem:[%s717_s1 + $0x3c] sm:$0x3]  ;;  %355 = vst [vmem:[%s718_s2 + $0x30] sm:$0x3] %v126_v39  ;;  %v366_v49 = vld [vmem:[%s717_s1 + $0x2] sm:$0x3] }
  0x11   :  { %v156_v48 = vsub.f32 %v362_v45, %v363_v46  ;;  %v369_v51 = vld [vmem:[%s717_s1 + $0x6] sm:$0x3]  ;;  %358 = vst [vmem:[%s718_s2 + $0x34] sm:$0x3] %v136_v43  ;;  %361 = vst [vmem:[%s718_s2 + $0x38] sm:$0x3] %v146_v44  ;;  %v166_v52 = vsub.f32 %v365_v47, %v366_v49 }
  0x12   :  { %v176_v53 = vsub.f32 %v368_v50, %v369_v51  ;;  %v371_v54 = vld [vmem:[%s716_s0 + $0xa] sm:$0x3]  ;;  %v374_v56 = vld [vmem:[%s716_s0 + $0xe] sm:$0x3]  ;;  %v377_v59 = vld [vmem:[%s716_s0 + $0x12] sm:$0x3] }
  0x13   :  { %v372_v55 = vld [vmem:[%s717_s1 + $0xa] sm:$0x3]  ;;  %364 = vst [vmem:[%s718_s2 + $0x3c] sm:$0x3] %v156_v48  ;;  %v375_v58 = vld [vmem:[%s717_s1 + $0xe] sm:$0x3] }
  0x14   :  { %v186_v57 = vsub.f32 %v371_v54, %v372_v55  ;;  %v378_v60 = vld [vmem:[%s717_s1 + $0x12] sm:$0x3]  ;;  %367 = vst [vmem:[%s718_s2 + $0x2] sm:$0x3] %v166_v52  ;;  %370 = vst [vmem:[%s718_s2 + $0x6] sm:$0x3] %v176_v53  ;;  %v196_v61 = vsub.f32 %v374_v56, %v375_v58 }
  0x15   :  { %v206_v62 = vsub.f32 %v377_v59, %v378_v60  ;;  %v380_v63 = vld [vmem:[%s716_s0 + $0x16] sm:$0x3]  ;;  %v383_v1 = vld [vmem:[%s716_s0 + $0x1a] sm:$0x3]  ;;  %v386_v4 = vld [vmem:[%s716_s0 + $0x1e] sm:$0x3] }
  0x16   :  { %v381_v0 = vld [vmem:[%s717_s1 + $0x16] sm:$0x3]  ;;  %373 = vst [vmem:[%s718_s2 + $0xa] sm:$0x3] %v186_v57  ;;  %v384_v3 = vld [vmem:[%s717_s1 + $0x1a] sm:$0x3] }
  0x17   :  { %v216_v2 = vsub.f32 %v380_v63, %v381_v0  ;;  %v387_v5 = vld [vmem:[%s717_s1 + $0x1e] sm:$0x3]  ;;  %376 = vst [vmem:[%s718_s2 + $0xe] sm:$0x3] %v196_v61  ;;  %379 = vst [vmem:[%s718_s2 + $0x12] sm:$0x3] %v206_v62  ;;  %v226_v6 = vsub.f32 %v383_v1, %v384_v3 }
  0x18   :  { %v236_v7 = vsub.f32 %v386_v4, %v387_v5  ;;  %v389_v8 = vld [vmem:[%s716_s0 + $0x22] sm:$0x3]  ;;  %v392_v10 = vld [vmem:[%s716_s0 + $0x26] sm:$0x3]  ;;  %v395_v13 = vld [vmem:[%s716_s0 + $0x2a] sm:$0x3] }
  0x19   :  { %v390_v9 = vld [vmem:[%s717_s1 + $0x22] sm:$0x3]  ;;  %382 = vst [vmem:[%s718_s2 + $0x16] sm:$0x3] %v216_v2  ;;  %v393_v12 = vld [vmem:[%s717_s1 + $0x26] sm:$0x3] }
  0x1a   :  { %v246_v11 = vsub.f32 %v389_v8, %v390_v9  ;;  %v396_v14 = vld [vmem:[%s717_s1 + $0x2a] sm:$0x3]  ;;  %385 = vst [vmem:[%s718_s2 + $0x1a] sm:$0x3] %v226_v6  ;;  %388 = vst [vmem:[%s718_s2 + $0x1e] sm:$0x3] %v236_v7  ;;  %v256_v15 = vsub.f32 %v392_v10, %v393_v12 }
  0x1b   :  { %v266_v16 = vsub.f32 %v395_v13, %v396_v14  ;;  %v398_v17 = vld [vmem:[%s716_s0 + $0x2e] sm:$0x3]  ;;  %v401_v19 = vld [vmem:[%s716_s0 + $0x32] sm:$0x3]  ;;  %v404_v22 = vld [vmem:[%s716_s0 + $0x36] sm:$0x3] }
  0x1c   :  { %v399_v18 = vld [vmem:[%s717_s1 + $0x2e] sm:$0x3]  ;;  %391 = vst [vmem:[%s718_s2 + $0x22] sm:$0x3] %v246_v11  ;;  %v402_v21 = vld [vmem:[%s717_s1 + $0x32] sm:$0x3] }
  0x1d   :  { %v276_v20 = vsub.f32 %v398_v17, %v399_v18  ;;  %v405_v23 = vld [vmem:[%s717_s1 + $0x36] sm:$0x3]  ;;  %394 = vst [vmem:[%s718_s2 + $0x26] sm:$0x3] %v256_v15  ;;  %397 = vst [vmem:[%s718_s2 + $0x2a] sm:$0x3] %v266_v16  ;;  %v286_v24 = vsub.f32 %v401_v19, %v402_v21 }
  0x1e   :  { %v296_v25 = vsub.f32 %v404_v22, %v405_v23  ;;  %v407_v26 = vld [vmem:[%s716_s0 + $0x3a] sm:$0x3]  ;;  %v410_v28 = vld [vmem:[%s716_s0 + $0x3e] sm:$0x3] }
  0x1f   :  { %v408_v27 = vld [vmem:[%s717_s1 + $0x3a] sm:$0x3]  ;;  %400 = vst [vmem:[%s718_s2 + $0x2e] sm:$0x3] %v276_v20  ;;  %v411_v30 = vld [vmem:[%s717_s1 + $0x3e] sm:$0x3] }
  0x20   :  { %v306_v29 = vsub.f32 %v407_v26, %v408_v27  ;;  %403 = vst [vmem:[%s718_s2 + $0x32] sm:$0x3] %v286_v24  ;;  %406 = vst [vmem:[%s718_s2 + $0x36] sm:$0x3] %v296_v25  ;;  %v316_v31 = vsub.f32 %v410_v28, %v411_v30 }
  0x22   :  { %409 = vst [vmem:[%s718_s2 + $0x3a] sm:$0x3] %v306_v29  ;;  %412 = vst [vmem:[%s718_s2 + $0x3e] sm:$0x3] %v316_v31 }

// kernel: sin.8
= control target key start
LH: loop header
LB: loop body
LE: loop exit
PB: predicated region body
PF: predicated region fallthrough
CT: control target
= control target key end

     0   :  { %v980_v30 = vmov 683565275   ;;  %v981_v32 = vmov 2475754826   ;;  %v982_v34 = vmov 2131351028   ;;  %s1647_s0 = inlined_call_operand.vmem [shape: f32[4,16,17], index: 0, kind: input, shape index: {}]   ;;  %s1648_s1 = inlined_call_operand.vmem [shape: f32[4,16,17], index: 1, kind: output, shape index: {}]  }
   0x1   :  { %v999_v0 = vld [vmem:[%s1647_s0] sm:$0xff]  ;;  %v1004_v1 = vld [vmem:[%s1647_s0 + $0x10] sm:$0xff]  ;;  %v983_v36 = vmov 2102212464   ;;  %v984_v38 = vmov 920167782  }
   0x2   :  { %v3_v2 = vand.u32 2147483647, %v999_v0  ;;  %v6_v3 = vand.u32 2139095040, %v999_v0  ;;  %v110_v4 = vand.u32 2147483647, %v1004_v1  ;;  %v113_v5 = vand.u32 2139095040, %v1004_v1 }
   0x3   :  { %v1013_v6 = vld [vmem:[%s1647_s0 + $0x20] sm:$0xff]  ;;  %v985_v46 = vmov 1326507024   ;;  %vm5_vm13 = vcmp.lt.s32.totalorder %v999_v0, 0 }
   0x4   :  { %v7_v7 = vshrl.u32 %v6_v3, 23  ;;  %v10_v8 = vand.u32 8388607, %v3_v2  ;;  %v114_v9 = vshrl.u32 %v113_v5, 23  ;;  %v117_v10 = vand.u32 8388607, %v110_v4 }
   0x5   :  { %v221_v12 = vand.u32 2139095040, %v1013_v6  ;;  %v218_v24 = vand.u32 2147483647, %v1013_v6 }
   0x6   :  { %v864_v11 = vadd.s32 4294967169, %v7_v7  ;;  %v869_v13 = vadd.s32 4294967169, %v114_v9  ;;  %v11_v16 = vor.u32 8388608, %v10_v8  ;;  %v118_v17 = vor.u32 8388608, %v117_v10 }
   0x7   :  { %v222_v15 = vshrl.u32 %v221_v12, 23 }
   0x8   :  { %v13_v14 = vadd.s32 1, %v864_v11  ;;  %v120_v18 = vadd.s32 1, %v869_v13  ;;  %v1021_v25 = vshll.u32 %v11_v16, 8  ;;  %v1023_v27 = vshll.u32 %v118_v17, 8 }
   0x9   :  { %v875_v19 = vadd.s32 4294967169, %v222_v15 }
   0xa   :  { %vm14_vm0 = vcmp.gt.s32.totalorder %v13_v14, 0  ;;  %vm121_vm1 = vcmp.gt.s32.totalorder %v120_v18, 0 }
   0xb   :  { %v15_v20 = vsel %vm14_vm0, %v13_v14, 0  ;;  %v122_v23 = vsel %vm121_vm1, %v120_v18, 0  ;;  %v1025_v28 = vadd.s32 1, %v875_v19  ;;  %vm1141_vm0 = vcmp.le.f32.partialorder %v3_v2, 0.7853982 }
   0xc   :  { %v16_v21 = vshrl.u32 %v15_v20, 5  ;;  %v17_v22 = vand.u32 31, %v15_v20  ;;  %v124_v26 = vand.u32 31, %v122_v23  ;;  %v1032_v40 = vshrl.u32 %v122_v23, 5 }
   0xd   :  { %vm229_vm11 = vcmp.gt.s32.totalorder %v1025_v28, 0 }
   0xe   :  { %v18_v29 = vsub.s32 32, %v17_v22  ;;  %v20_v31 = vshll.u32 %v980_v30, %v17_v22  ;;  %v23_v33 = vshll.u32 %v981_v32, %v17_v22  ;;  %v26_v35 = vshll.u32 %v982_v34, %v17_v22 }
   0xf   :  { %v29_v37 = vshll.u32 %v983_v36, %v17_v22  ;;  %v32_v39 = vshll.u32 %v984_v38, %v17_v22  ;;  %vm35_vm2 = vcmp.lt.s32.totalorder %v16_v21, 1  ;;  %vm36_vm3 = vcmp.lt.s32.totalorder %v16_v21, 2 }
  0x10   :  { %v19_v41 = vshrl.u32 %v980_v30, %v18_v29  ;;  %v21_v42 = vshrl.u32 %v981_v32, %v18_v29  ;;  %v24_v43 = vshrl.u32 %v982_v34, %v18_v29  ;;  %v27_v44 = vshrl.u32 %v983_v36, %v18_v29 }
  0x11   :  { %v30_v45 = vshrl.u32 %v984_v38, %v18_v29  ;;  %v33_v47 = vshrl.u32 %v985_v46, %v18_v29  ;;  %vm38_vm4 = vcmp.lt.s32.totalorder %v16_v21, 4  ;;  %v125_v51 = vsub.s32 32, %v124_v26 }
  0x12   :  { %v22_v48 = vor.u32 %v21_v42, %v20_v31  ;;  %v25_v49 = vor.u32 %v24_v43, %v23_v33  ;;  %v28_v50 = vor.u32 %v27_v44, %v26_v35  ;;  %vm37_vm5 = vcmp.lt.s32.totalorder %v16_v21, 3 }
  0x13   :  { %v31_v52 = vor.u32 %v30_v45, %v29_v37  ;;  %v34_v53 = vor.u32 %v33_v47, %v32_v39  ;;  %v127_v54 = vshll.u32 %v980_v30, %v124_v26  ;;  %v130_v62 = vshll.u32 %v981_v32, %v124_v26 }
  0x14   :  { %v39_v55 = vsel %vm35_vm2, %v19_v41, %v22_v48  ;;  %v40_v56 = vsel %vm38_vm4, %v28_v50, 2102212464  ;;  %v43_v57 = vsel %vm35_vm2, %v22_v48, %v25_v49  ;;  %v47_v58 = vsel %vm35_vm2, %v25_v49, %v28_v50 }
  0x15   :  { %v41_v59 = vsel %vm37_vm5, %v25_v49, %v40_v56  ;;  %v44_v60 = vsel %vm38_vm4, %v31_v52, 920167782  ;;  %v48_v61 = vsel %vm38_vm4, %v34_v53, 1326507024  ;;  %v126_v5 = vshrl.u32 %v980_v30, %v125_v51 }
  0x16   :  { %v45_v63 = vsel %vm37_vm5, %v28_v50, %v44_v60  ;;  %v49_v3 = vsel %vm37_vm5, %v31_v52, %v48_v61  ;;  %v128_v7 = vshrl.u32 %v981_v32, %v125_v51  ;;  %v42_v8 = vsel %vm36_vm3, %v39_v55, %v41_v59 }
  0x17   :  { %v46_v9 = vsel %vm36_vm3, %v43_v57, %v45_v63  ;;  %v50_v10 = vsel %vm36_vm3, %v47_v58, %v49_v3  ;;  %v131_v11 = vshrl.u32 %v982_v34, %v125_v51  ;;  %v133_v18 = vshll.u32 %v982_v34, %v124_v26 }
  0x18   :  { %v1052_v12 = vmul.u32.u64.low %v1021_v25, %v50_v10  ;;  %v1053_v13 = vmul.u32.u64.high %v1021_v25, %v50_v10, %v1052_v12  ;;  %v1056_v14 = vmul.u32.u64.low %v1021_v25, %v46_v9  ;;  %v1057_v15 = vmul.u32.u64.high %v1021_v25, %v46_v9, %v1056_v14 }
  0x19   :  { %v129_v16 = vor.u32 %v128_v7, %v127_v54  ;;  %v132_v17 = vor.u32 %v131_v11, %v130_v62  ;;  %v134_v19 = vshrl.u32 %v983_v36, %v125_v51  ;;  %v136_v20 = vshll.u32 %v983_v36, %v124_v26  ;;  %v1102_v62 = vld [vmem:[%s1647_s0 + $0x30] sm:$0xff] }
  0x1a   :  { %v137_v21 = vshrl.u32 %v984_v38, %v125_v51  ;;  %v139_v22 = vshll.u32 %v984_v38, %v124_v26  ;;  %v140_v23 = vshrl.u32 %v985_v46, %v125_v51  ;;  %v58_v25 = vmul.u32 %v1021_v25, %v42_v8 }
  0x1b   :  { %v135_v26 = vor.u32 %v134_v19, %v133_v18  ;;  %vm142_vm6 = vcmp.lt.s32.totalorder %v1032_v40, 1  ;;  %vm143_vm7 = vcmp.lt.s32.totalorder %v1032_v40, 2  ;;  %vm60_vm8 = vc.u32 %v1053_v13, %v1056_v14 }
  0x1c   :  { %v61_v29 = vadd.s32 1, %v1057_v15  ;;  %v138_v31 = vor.u32 %v137_v21, %v136_v20  ;;  %vm144_vm9 = vcmp.lt.s32.totalorder %v1032_v40, 3  ;;  %v141_v33 = vor.u32 %v140_v23, %v139_v22 }
  0x1d   :  { %vm145_vm10 = vcmp.lt.s32.totalorder %v1032_v40, 4  ;;  %v146_v35 = vsel %vm142_vm6, %v126_v5, %v129_v16  ;;  %v150_v37 = vsel %vm142_vm6, %v129_v16, %v132_v17  ;;  %v154_v43 = vsel %vm142_vm6, %v132_v17, %v135_v26 }
  0x1e   :  { %v62_v39 = vsel %vm60_vm8, %v61_v29, %v1057_v15  ;;  %v147_v41 = vsel %vm145_vm10, %v135_v26, 2102212464  ;;  %v151_v42 = vsel %vm145_vm10, %v138_v31, 920167782  ;;  %v155_v48 = vsel %vm145_vm10, %v141_v33, 1326507024 }
  0x1f   :  { %v63_v44 = vadd.s32 %v62_v39, %v58_v25  ;;  %v148_v45 = vsel %vm144_vm9, %v132_v17, %v147_v41  ;;  %v152_v47 = vsel %vm144_vm9, %v135_v26, %v151_v42  ;;  %v156_v51 = vsel %vm144_vm9, %v138_v31, %v155_v48 }
  0x20   :  { %v149_v49 = vsel %vm143_vm7, %v146_v35, %v148_v45  ;;  %v153_v50 = vsel %vm143_vm7, %v150_v37, %v152_v47  ;;  %v157_v40 = vsel %vm143_vm7, %v154_v43, %v156_v51  ;;  %v230_v28 = vsel %vm229_vm11, %v1025_v28, 0 }
  0x21   :  { %v64_v52 = vadd.s32 536870912, %v63_v44  ;;  %v1083_v53 = vmul.u32.u64.low %v1023_v27, %v153_v50  ;;  %v1084_v54 = vmul.u32.u64.high %v1023_v27, %v153_v50, %v1083_v53  ;;  %v232_v58 = vand.u32 31, %v230_v28 }
  0x22   :  { %v1088_v55 = vmul.u32.u64.low %v1023_v27, %v157_v40  ;;  %v1089_v56 = vmul.u32.u64.high %v1023_v27, %v157_v40, %v1088_v55  ;;  %v165_v27 = vmul.u32 %v1023_v27, %v149_v49  ;;  %v225_v59 = vand.u32 8388607, %v218_v24 }
  0x23   :  { %v1092_v57 = vshrl.u32 %v64_v52, 30  ;;  %v168_v61 = vadd.s32 1, %v1084_v54  ;;  %v233_v63 = vsub.s32 32, %v232_v58  ;;  %v329_v9 = vand.u32 2139095040, %v1102_v62 }
  0x24   :  { %vm167_vm12 = vc.u32 %v1089_v56, %v1083_v53  ;;  %v226_v8 = vor.u32 8388608, %v225_v59  ;;  %v1111_v11 = vshrl.u32 %v230_v28, 5  ;;  %v235_v12 = vshll.u32 %v980_v30, %v232_v58 }
  0x25   :  { %v66_v60 = vshll.u32 %v1092_v57, 30  ;;  %v169_v5 = vsel %vm167_vm12, %v168_v61, %v1084_v54  ;;  %v238_v15 = vshll.u32 %v981_v32, %v232_v58  ;;  %v236_v17 = vshrl.u32 %v981_v32, %v233_v63 }
  0x26   :  { %v170_v7 = vadd.s32 %v169_v5, %v165_v27  ;;  %v239_v18 = vshrl.u32 %v982_v34, %v233_v63  ;;  %v241_v19 = vshll.u32 %v982_v34, %v232_v58  ;;  %v242_v21 = vshrl.u32 %v983_v36, %v233_v63 }
  0x27   :  { %v1106_v3 = vsub.s32 %v63_v44, %v66_v60  ;;  %v244_v22 = vshll.u32 %v983_v36, %v232_v58  ;;  %v245_v23 = vshrl.u32 %v984_v38, %v233_v63  ;;  %v247_v26 = vshll.u32 %v984_v38, %v232_v58 }
  0x28   :  { %v171_v16 = vadd.s32 536870912, %v170_v7  ;;  %v248_v29 = vshrl.u32 %v985_v46, %v233_v63  ;;  %v326_v31 = vand.u32 2147483647, %v1102_v62  ;;  %v59_v13 = vadd.s32 %v1056_v14, %v1053_v13 }
  0x29   :  { %v69_v10 = vsub.s32 0, %v1106_v3  ;;  %v1130_v33 = vshll.u32 %v226_v8, 8  ;;  %v330_v35 = vshrl.u32 %v329_v9, 23  ;;  %v234_v39 = vshrl.u32 %v980_v30, %v233_v63 }
  0x2a   :  { %v1122_v25 = vshrl.u32 %v171_v16, 30  ;;  %v237_v41 = vor.u32 %v236_v17, %v235_v12  ;;  %v240_v42 = vor.u32 %v239_v18, %v238_v15  ;;  %v243_v44 = vor.u32 %v242_v21, %v241_v19 }
  0x2b   :  { %v865_v20 = vmin.u32 %v69_v10, %v1106_v3  ;;  %v246_v45 = vor.u32 %v245_v23, %v244_v22  ;;  %vm250_vm14 = vcmp.lt.s32.totalorder %v1111_v11, 1  ;;  %v89_v47 = vsub.s32 4, %v1092_v57 }
  0x2c   :  { %v173_v37 = vshll.u32 %v1122_v25, 30  ;;  %v249_v49 = vor.u32 %v248_v29, %v247_v26  ;;  %vm253_vm15 = vcmp.lt.s32.totalorder %v1111_v11, 4  ;;  %vm251_vm2 = vcmp.lt.s32.totalorder %v1111_v11, 2 }
  0x2d   :  { %v71_v14 = vclz %v865_v20  ;;  %vm252_vm3 = vcmp.lt.s32.totalorder %v1111_v11, 3  ;;  %v255_v50 = vsel %vm253_vm15, %v243_v44, 2102212464  ;;  %v254_v40 = vsel %vm250_vm14, %v234_v39, %v237_v41 }
  0x2e   :  { %v1136_v48 = vsub.s32 %v170_v7, %v173_v37  ;;  %v258_v54 = vsel %vm250_vm14, %v237_v41, %v240_v42  ;;  %v259_v27 = vsel %vm253_vm15, %v246_v45, 920167782  ;;  %v256_v60 = vsel %vm252_vm3, %v240_v42, %v255_v50 }
  0x2f   :  { %v866_v43 = vadd.s32 4294967294, %v71_v14  ;;  %v260_v61 = vsel %vm252_vm3, %v243_v44, %v259_v27  ;;  %v262_v63 = vsel %vm250_vm14, %v240_v42, %v243_v44  ;;  %v263_v8 = vsel %vm253_vm15, %v249_v49, 1326507024 }
  0x30   :  { %v176_v52 = vsub.s32 0, %v1136_v48  ;;  %v261_v7 = vsel %vm251_vm2, %v258_v54, %v260_v61  ;;  %v90_v57 = vsel %vm5_vm13, %v89_v47, %v1092_v57  ;;  %vm112_vm4 = vcmp.lt.s32.totalorder %v1004_v1, 0  ;;  %v1214_v54 = vld [vmem:[%s1647_s0 + $0x8] sm:$0xff] }
  0x31   :  { %vm867_vm1 = vcmp.lt.s32.totalorder %v866_v43, 0  ;;  %v881_v10 = vadd.s32 4294967169, %v330_v35  ;;  %v1174_v12 = vand.u32 8388607, %v326_v31  ;;  %v257_v17 = vsel %vm251_vm2, %v254_v40, %v256_v60 }
  0x32   :  { %v74_v51 = vsel %vm867_vm1, 0, %v866_v43  ;;  %v870_v59 = vmin.u32 %v176_v52, %v1136_v48  ;;  %v264_v18 = vsel %vm252_vm3, %v246_v45, %v263_v8  ;;  %vm1189_vm5 = vcmp.le.f32.partialorder %v110_v4, 0.7853982 }
  0x33   :  { %v75_v55 = vsub.s32 32, %v74_v51  ;;  %v76_v28 = vshll.u32 %v1106_v3, %v74_v51  ;;  %v79_v58 = vsub.s32 4294967266, %v74_v51  ;;  %v265_v11 = vsel %vm251_vm2, %v262_v63, %v264_v18 }
  0x34   :  { %v178_v9 = vclz %v870_v59  ;;  %v1183_v20 = vmul.u32.u64.low %v1130_v33, %v261_v7  ;;  %v1184_v21 = vmul.u32.u64.high %v1130_v33, %v261_v7, %v1183_v20  ;;  %v166_v53 = vadd.s32 %v1083_v53, %v1089_v56 }
  0x35   :  { %v77_v3 = vshrl.u32 %v59_v13, %v75_v55  ;;  %v80_v5 = vadd.s32 127, %v79_v58  ;;  %v1194_v26 = vmul.u32.u64.low %v1130_v33, %v265_v11  ;;  %v1195_v29 = vmul.u32.u64.high %v1130_v33, %v265_v11, %v1194_v26 }
  0x36   :  { %v871_v19 = vadd.s32 4294967294, %v178_v9  ;;  %v92_v13 = vsel %vm1141_vm0, 0, %v90_v57  ;;  %v336_v56 = vadd.s32 1, %v881_v10  ;;  %v196_v37 = vsub.s32 4, %v1122_v25 }
  0x37   :  { %v78_v15 = vor.u32 %v77_v3, %v76_v28  ;;  %v81_v16 = vshll.u32 %v80_v5, 23  ;;  %v273_v33 = vmul.u32 %v1130_v33, %v257_v17  ;;  %v276_v43 = vadd.s32 1, %v1184_v21 }
  0x38   :  { %vm872_vm6 = vcmp.lt.s32.totalorder %v871_v19, 0  ;;  %v96_v45 = vadd.s32 3, %v92_v13  ;;  %vm275_vm7 = vc.u32 %v1195_v29, %v1183_v20  ;;  %vm337_vm8 = vcmp.gt.s32.totalorder %v336_v56, 0 }
  0x39   :  { %v82_v22 = vor.u32 4788187, %v81_v16  ;;  %v85_v23 = vcvt.s32.f32 %v78_v15  ;;  %v181_v35 = vsel %vm872_vm6, 0, %v871_v19  ;;  %v277_v49 = vsel %vm275_vm7, %v276_v43, %v1184_v21 }
  0x3a   :  { %v182_v39 = vsub.s32 32, %v181_v35  ;;  %v183_v41 = vshll.u32 %v1136_v48, %v181_v35  ;;  %v186_v42 = vsub.s32 4294967266, %v181_v35  ;;  %v338_v50 = vsel %vm337_vm8, %v336_v56, 0 }
  0x3b   :  { %v83_v14 = vand.u32 2147483647, %v82_v22  ;;  %v197_v25 = vsel %vm112_vm4, %v196_v37, %v1122_v25  ;;  %v278_v52 = vadd.s32 %v277_v49, %v273_v33  ;;  %v340_v40 = vand.u32 31, %v338_v50 }
  0x3c   :  { %v184_v47 = vshrl.u32 %v166_v53, %v182_v39  ;;  %v187_v48 = vadd.s32 127, %v186_v42  ;;  %v334_v58 = vor.u32 8388608, %v1174_v12  ;;  %v434_v27 = vand.u32 2147483647, %v1214_v54 }
  0x3d   :  { %v86_v44 = vmul.f32 %v85_v23, %v83_v14  ;;  %v1220_v60 = vand.u32 3, %v96_v45  ;;  %v279_v61 = vadd.s32 536870912, %v278_v52  ;;  %v341_v63 = vsub.s32 32, %v340_v40 }
  0x3e   :  { %v185_v55 = vor.u32 %v184_v47, %v183_v41  ;;  %v188_v28 = vshll.u32 %v187_v48, 23  ;;  %v199_v7 = vsel %vm1189_vm5, 0, %v197_v25  ;;  %v343_v57 = vshll.u32 %v980_v30, %v340_v40 }
  0x3f   :  { %v87_v51 = vxor.u32 2147483648, %v86_v44  ;;  %v1227_v8 = vshrl.u32 %v279_v61, 30  ;;  %v344_v9 = vshrl.u32 %v981_v32, %v341_v63  ;;  %v346_v12 = vshll.u32 %v981_v32, %v340_v40 }
  0x40   :  { %v189_v3 = vor.u32 4788187, %v188_v28  ;;  %v192_v5 = vcvt.s32.f32 %v185_v55  ;;  %v347_v15 = vshrl.u32 %v982_v34, %v341_v63  ;;  %v1233_v16 = vadd.s32 3, %v199_v7 }
  0x41   :  { %v88_v59 = vsel %vm5_vm13, %v87_v51, %v86_v44  ;;  %v281_v17 = vshll.u32 %v1227_v8, 30  ;;  %v339_v18 = vshrl.u32 %v338_v50, 5  ;;  %v349_v19 = vshll.u32 %v982_v34, %v340_v40 }
  0x42   :  { %v91_v2 = vsel %vm1141_vm0, %v999_v0, %v88_v59  ;;  %v190_v10 = vand.u32 2147483647, %v189_v3  ;;  %v350_v21 = vshrl.u32 %v983_v36, %v341_v63  ;;  %v352_v22 = vshll.u32 %v983_v36, %v340_v40 }
  0x43   :  { %948 = vcosq.f32 %v91_v2  ;;  %v353_v23 = vshrl.u32 %v984_v38, %v341_v63  ;;  %v1240_v26 = vsub.s32 %v278_v52, %v281_v17  ;;  %v345_v13 = vor.u32 %v344_v9, %v343_v57 }
  0x44   :  { %950 = vsinq.f32 %v91_v2  ;;  %v193_v11 = vmul.f32 %v192_v5, %v190_v10  ;;  %v355_v53 = vshll.u32 %v984_v38, %v340_v40  ;;  %v1243_v56 = vshll.u32 %v334_v58, 8 }
  0x45   :  { %vm102_vm9 = vcmp.eq.s32.totalorder %v1220_v60, 2  ;;  %v348_v35 = vor.u32 %v347_v15, %v346_v12  ;;  %v354_v37 = vor.u32 %v353_v23, %v352_v22  ;;  %v356_v33 = vshrl.u32 %v985_v46, %v341_v63 }
  0x46   :  { %v194_v14 = vxor.u32 2147483648, %v193_v11  ;;  %vm99_vm10 = vcmp.eq.s32.totalorder %v1220_v60, 0  ;;  %v284_v39 = vsub.s32 0, %v1240_v26  ;;  %v342_v41 = vshrl.u32 %v980_v30, %v341_v63 }
  0x47   :  { %vm358_vm11 = vcmp.lt.s32.totalorder %v339_v18, 1  ;;  %v437_v42 = vand.u32 2139095040, %v1214_v54  ;;  %vm98_vm12 = vcmp.lt.s32.totalorder %v1220_v60, 2  ;;  %v351_v44 = vor.u32 %v350_v21, %v349_v19 }
  0x48   :  { %v195_v43 = vsel %vm112_vm4, %v194_v14, %v193_v11  ;;  %vm359_vm13 = vcmp.lt.s32.totalorder %v339_v18, 2  ;;  %vm361_vm14 = vcmp.lt.s32.totalorder %v339_v18, 4  ;;  %vm95_vm15 = vweird.f32 %v999_v0 }
  0x49   :  { %v198_v4 = vsel %vm1189_vm5, %v1004_v1, %v195_v43  ;;  %v876_v45 = vmin.u32 %v284_v39, %v1240_v26  ;;  %v357_v47 = vor.u32 %v356_v33, %v355_v53  ;;  %vm360_vm0 = vcmp.lt.s32.totalorder %v339_v18, 3 }
  0x4a   :  { %952 = vcosq.f32 %v198_v4  ;;  %v363_v48 = vsel %vm361_vm14, %v351_v44, 2102212464  ;;  %v366_v49 = vsel %vm358_vm11, %v345_v13, %v348_v35  ;;  %v367_v50 = vsel %vm361_vm14, %v354_v37, 920167782 }
  0x4b   :  { %954 = vsinq.f32 %v198_v4  ;;  %v286_v51 = vclz %v876_v45  ;;  %v362_v25 = vsel %vm358_vm11, %v342_v41, %v345_v13  ;;  %v438_v52 = vshrl.u32 %v437_v42, 23 }
  0x4c   :  { %v274_v20 = vadd.s32 %v1183_v20, %v1195_v29  ;;  %v364_v29 = vsel %vm360_vm0, %v348_v35, %v363_v48  ;;  %v368_v40 = vsel %vm360_vm0, %v351_v44, %v367_v50  ;;  %v370_v55 = vsel %vm358_vm11, %v348_v35, %v351_v44 }
  0x4d   :  { %vm220_vm1 = vcmp.lt.s32.totalorder %v1013_v6, 0  ;;  %v877_v28 = vadd.s32 4294967294, %v286_v51  ;;  %v304_v58 = vsub.s32 4, %v1227_v8  ;;  %v369_v59 = vsel %vm359_vm13, %v366_v49, %v368_v40 }
  0x4e   :  { %v371_v61 = vsel %vm361_vm14, %v357_v47, 1326507024  ;;  %v365_v2 = vsel %vm359_vm13, %v362_v25, %v364_v29  ;;  %v1275_v5 = vmul.u32.u64.low %v1243_v56, %v369_v59  ;;  %v1276_v7 = vmul.u32.u64.high %v1243_v56, %v369_v59, %v1275_v5 }
  0x4f   :  { %v372_v3 = vsel %vm360_vm0, %v354_v37, %v371_v61  ;;  %vm878_vm2 = vcmp.lt.s32.totalorder %v877_v28, 0  ;;  %v887_v12 = vadd.s32 4294967169, %v438_v52  ;;  %vm202_vm3 = vweird.f32 %v1004_v1 }
  0x50   :  { %v949_v63 = vpop.eup %948  ;;  %v373_v10 = vsel %vm359_vm13, %v370_v55, %v372_v3  ;;  %v289_v17 = vsel %vm878_vm2, 0, %v877_v28  ;;  %v381_v13 = vmul.u32 %v1243_v56, %v365_v2  ;;  %v384_v53 = vadd.s32 1, %v1276_v7 }
  0x51   :  { %v951_v57 = vpop.eup %950  ;;  %v103_v9 = vxor.u32 2147483648, %v949_v63  ;;  %v1281_v18 = vmul.u32.u64.low %v1243_v56, %v373_v10  ;;  %v1282_v19 = vmul.u32.u64.high %v1243_v56, %v373_v10, %v1281_v18  ;;  %v290_v21 = vsub.s32 32, %v289_v17 }
  0x52   :  { %v100_v15 = vxor.u32 2147483648, %v951_v57  ;;  %v291_v22 = vshll.u32 %v1240_v26, %v289_v17  ;;  %v294_v23 = vsub.s32 4294967266, %v289_v17  ;;  %v444_v56 = vadd.s32 1, %v887_v12 }
  0x53   :  { %v104_v11 = vsel %vm102_vm9, %v103_v9, %v951_v57  ;;  %v204_v16 = vand.u32 3, %v1233_v16  ;;  %v292_v14 = vshrl.u32 %v274_v20, %v290_v21  ;;  %vm383_vm4 = vc.u32 %v1282_v19, %v1275_v5 }
  0x54   :  { %v101_v26 = vsel %vm99_vm10, %v949_v63, %v100_v15  ;;  %v295_v35 = vadd.s32 127, %v294_v23  ;;  %v1301_v37 = vand.u32 8388607, %v434_v27  ;;  %vm445_vm5 = vcmp.gt.s32.totalorder %v444_v56, 0 }
  0x55   :  { %v105_v60 = vsel %vm98_vm12, %v101_v26, %v104_v11  ;;  %v293_v33 = vor.u32 %v292_v14, %v291_v22  ;;  %v385_v41 = vsel %vm383_vm4, %v384_v53, %v1276_v7  ;;  %v446_v42 = vsel %vm445_vm5, %v444_v56, 0  ;;  %v1350_v14 = vld [vmem:[%s1647_s0 + $0x18] sm:$0xff] }
  0x56   :  { %v106_v0 = vsel %vm95_vm15, nan, %v105_v60  ;;  %v296_v39 = vshll.u32 %v295_v35, 23  ;;  %vm1309_vm6 = vcmp.le.f32.partialorder %v218_v24, 0.7853982  ;;  %v305_v8 = vsel %vm220_vm1, %v304_v58, %v1227_v8 }
  0x57   :  { %107 = vst [vmem:[%s1648_s1] sm:$0xff] %v106_v0  ;;  %v386_v43 = vadd.s32 %v385_v41, %v381_v13  ;;  %v448_v44 = vand.u32 31, %v446_v42  ;;  %v953_v4 = vpop.eup %952  ;;  %vm205_vm7 = vcmp.lt.s32.totalorder %v204_v16, 2  ;;  %vm209_vm8 = vcmp.eq.s32.totalorder %v204_v16, 2 }
  0x58   :  { %v297_v45 = vor.u32 4788187, %v296_v39  ;;  %v300_v47 = vcvt.s32.f32 %v293_v33  ;;  %v955_v48 = vpop.eup %954  ;;  %vm206_vm9 = vcmp.eq.s32.totalorder %v204_v16, 0  ;;  %v210_v49 = vxor.u32 2147483648, %v953_v4 }
  0x59   :  { %v387_v50 = vadd.s32 536870912, %v386_v43  ;;  %v449_v51 = vsub.s32 32, %v448_v44  ;;  %v207_v25 = vxor.u32 2147483648, %v955_v48  ;;  %v307_v20 = vsel %vm1309_vm6, 0, %v305_v8 }
  0x5a   :  { %v298_v52 = vand.u32 2147483647, %v297_v45  ;;  %v442_v29 = vor.u32 8388608, %v1301_v37  ;;  %v211_v40 = vsel %vm209_vm8, %v210_v49, %v955_v48  ;;  %v451_v28 = vshll.u32 %v980_v30, %v448_v44 }
  0x5b   :  { %v1319_v55 = vshrl.u32 %v387_v50, 30  ;;  %v454_v58 = vshll.u32 %v981_v32, %v448_v44  ;;  %v208_v59 = vsel %vm206_vm9, %v953_v4, %v207_v25  ;;  %v452_v63 = vshrl.u32 %v981_v32, %v449_v51 }
  0x5c   :  { %v301_v61 = vmul.f32 %v300_v47, %v298_v52  ;;  %v457_v2 = vshll.u32 %v982_v34, %v448_v44  ;;  %v212_v3 = vsel %vm205_vm7, %v208_v59, %v211_v40  ;;  %v455_v57 = vshrl.u32 %v982_v34, %v449_v51 }
  0x5d   :  { %v389_v7 = vshll.u32 %v1319_v55, 30  ;;  %v458_v9 = vshrl.u32 %v983_v36, %v449_v51  ;;  %v213_v1 = vsel %vm202_vm3, nan, %v212_v3  ;;  %v311_v12 = vadd.s32 3, %v307_v20 }
  0x5e   :  { %v302_v10 = vxor.u32 2147483648, %v301_v61  ;;  %v447_v15 = vshrl.u32 %v446_v42, 5  ;;  %873 = vst [vmem:[%s1648_s1 + $0x10] sm:$0xff] %v213_v1  ;;  %v450_v18 = vshrl.u32 %v980_v30, %v449_v51  ;;  %v460_v11 = vshll.u32 %v983_v36, %v448_v44  ;;  %v1386_v1 = vld [vmem:[%s1647_s0 + $0x28] sm:$0xff] }
  0x5f   :  { %v1334_v17 = vsub.s32 %v386_v43, %v389_v7  ;;  %v461_v21 = vshrl.u32 %v984_v38, %v449_v51  ;;  %v453_v23 = vor.u32 %v452_v63, %v451_v28  ;;  %v463_v26 = vshll.u32 %v984_v38, %v448_v44 }
  0x60   :  { %v303_v22 = vsel %vm220_vm1, %v302_v10, %v301_v61  ;;  %v464_v13 = vshrl.u32 %v985_v46, %v449_v51  ;;  %v456_v60 = vor.u32 %v455_v57, %v454_v58  ;;  %v459_v16 = vor.u32 %v458_v9, %v457_v2 }
  0x61   :  { %v306_v53 = vsel %vm1309_vm6, %v1013_v6, %v303_v22  ;;  %v392_v56 = vsub.s32 0, %v1334_v17  ;;  %v462_v35 = vor.u32 %v461_v21, %v460_v11  ;;  %vm466_vm10 = vcmp.lt.s32.totalorder %v447_v15, 1 }
  0x62   :  { %956 = vcosq.f32 %v306_v53  ;;  %v465_v0 = vor.u32 %v464_v13, %v463_v26  ;;  %v1352_v37 = vand.u32 3, %v311_v12  ;;  %vm468_vm11 = vcmp.lt.s32.totalorder %v447_v15, 3 }
  0x63   :  { %958 = vsinq.f32 %v306_v53  ;;  %v882_v33 = vmin.u32 %v392_v56, %v1334_v17  ;;  %vm469_vm12 = vcmp.lt.s32.totalorder %v447_v15, 4  ;;  %v482_v39 = vshll.u32 %v442_v29, 8 }
  0x64   :  { %v545_v41 = vand.u32 2139095040, %v1350_v14  ;;  %vm467_vm13 = vcmp.lt.s32.totalorder %v447_v15, 2  ;;  %v474_v24 = vsel %vm466_vm10, %v453_v23, %v456_v60  ;;  %v478_v8 = vsel %vm466_vm10, %v456_v60, %v459_v16 }
  0x65   :  { %v394_v42 = vclz %v882_v33  ;;  %v470_v43 = vsel %vm466_vm10, %v450_v18, %v453_v23  ;;  %v471_v44 = vsel %vm469_vm12, %v459_v16, 2102212464  ;;  %v475_v4 = vsel %vm469_vm12, %v462_v35, 920167782 }
  0x66   :  { %v479_v45 = vsel %vm469_vm12, %v465_v0, 1326507024  ;;  %v472_v48 = vsel %vm468_vm11, %v456_v60, %v471_v44  ;;  %v476_v49 = vsel %vm468_vm11, %v459_v16, %v475_v4  ;;  %v382_v5 = vadd.s32 %v1275_v5, %v1282_v19 }
  0x67   :  { %v883_v47 = vadd.s32 4294967294, %v394_v42  ;;  %v480_v50 = vsel %vm468_vm11, %v462_v35, %v479_v45  ;;  %v412_v19 = vsub.s32 4, %v1319_v55  ;;  %v477_v51 = vsel %vm467_vm13, %v474_v24, %v476_v49 }
  0x68   :  { %v481_v25 = vsel %vm467_vm13, %v478_v8, %v480_v50  ;;  %v473_v52 = vsel %vm467_vm13, %v470_v43, %v472_v48  ;;  %v1365_v28 = vmul.u32.u64.low %v482_v39, %v477_v51  ;;  %v1366_v58 = vmul.u32.u64.high %v482_v39, %v477_v51, %v1365_v28 }
  0x69   :  { %vm884_vm14 = vcmp.lt.s32.totalorder %v883_v47, 0  ;;  %v1362_v20 = vmul.u32.u64.low %v482_v39, %v481_v25  ;;  %v1363_v29 = vmul.u32.u64.high %v482_v39, %v481_v25, %v1362_v20  ;;  %v546_v59 = vshrl.u32 %v545_v41, 23 }
  0x6a   :  { %v397_v40 = vsel %vm884_vm14, 0, %v883_v47  ;;  %vm328_vm15 = vcmp.lt.s32.totalorder %v1102_v62, 0  ;;  %vm313_vm0 = vcmp.lt.s32.totalorder %v1352_v37, 2  ;;  %vm1374_vm1 = vcmp.le.f32.partialorder %v326_v31, 0.7853982 }
  0x6b   :  { %v398_v61 = vsub.s32 32, %v397_v40  ;;  %v399_v63 = vshll.u32 %v1334_v17, %v397_v40  ;;  %v402_v2 = vsub.s32 4294967266, %v397_v40  ;;  %v413_v55 = vsel %vm328_vm15, %v412_v19, %v1319_v55 }
  0x6c   :  { %v893_v3 = vadd.s32 4294967169, %v546_v59  ;;  %v489_v9 = vmul.u32 %v482_v39, %v473_v52  ;;  %vm491_vm2 = vc.u32 %v1363_v29, %v1365_v28  ;;  %vm314_vm3 = vcmp.eq.s32.totalorder %v1352_v37, 0 }
  0x6d   :  { %v400_v7 = vshrl.u32 %v382_v5, %v398_v61  ;;  %v403_v57 = vadd.s32 127, %v402_v2  ;;  %v492_v10 = vadd.s32 1, %v1366_v58  ;;  %v542_v12 = vand.u32 2147483647, %v1350_v14 }
  0x6e   :  { %v552_v15 = vadd.s32 1, %v893_v3  ;;  %vm317_vm4 = vcmp.eq.s32.totalorder %v1352_v37, 2  ;;  %v415_v21 = vsel %vm1374_vm1, 0, %v413_v55  ;;  %v653_v13 = vand.u32 2139095040, %v1386_v1 }
  0x6f   :  { %v957_v17 = vpop.eup %956  ;;  %v401_v18 = vor.u32 %v400_v7, %v399_v63  ;;  %v404_v11 = vshll.u32 %v403_v57, 23  ;;  %v493_v26 = vsel %vm491_vm2, %v492_v10, %v1366_v58  ;;  %vm310_vm6 = vweird.f32 %v1013_v6 }
  0x70   :  { %v959_v22 = vpop.eup %958  ;;  %v318_v23 = vxor.u32 2147483648, %v957_v17  ;;  %vm553_vm5 = vcmp.gt.s32.totalorder %v552_v15, 0  ;;  %v494_v16 = vadd.s32 %v493_v26, %v489_v9  ;;  %v549_v35 = vand.u32 8388607, %v542_v12 }
  0x71   :  { %v315_v53 = vxor.u32 2147483648, %v959_v22  ;;  %v405_v56 = vor.u32 4788187, %v404_v11  ;;  %v408_v60 = vcvt.s32.f32 %v401_v18  ;;  %v554_v0 = vsel %vm553_vm5, %v552_v15, 0 }
  0x72   :  { %v319_v6 = vsel %vm317_vm4, %v318_v23, %v959_v22  ;;  %v495_v41 = vadd.s32 536870912, %v494_v16  ;;  %v419_v42 = vadd.s32 3, %v415_v21  ;;  %v556_v24 = vand.u32 31, %v554_v0 }
  0x73   :  { %v316_v33 = vsel %vm314_vm3, %v957_v17, %v315_v53  ;;  %v406_v39 = vand.u32 2147483647, %v405_v56  ;;  %v654_v4 = vshrl.u32 %v653_v13, 23  ;;  %v550_v45 = vor.u32 8388608, %v549_v35 }
  0x74   :  { %v320_v37 = vsel %vm313_vm0, %v316_v33, %v319_v6  ;;  %v1403_v44 = vshrl.u32 %v495_v41, 30  ;;  %v555_v47 = vshrl.u32 %v554_v0, 5  ;;  %v557_v48 = vsub.s32 32, %v556_v24 }
  0x75   :  { %v321_v8 = vsel %vm310_vm6, nan, %v320_v37  ;;  %v409_v43 = vmul.f32 %v408_v60, %v406_v39  ;;  %v559_v49 = vshll.u32 %v980_v30, %v556_v24  ;;  %v562_v19 = vshll.u32 %v981_v32, %v556_v24 }
  0x76   :  { %879 = vst [vmem:[%s1648_s1 + $0x20] sm:$0xff] %v321_v8  ;;  %v497_v5 = vshll.u32 %v1403_v44, 30  ;;  %v565_v51 = vshll.u32 %v982_v34, %v556_v24  ;;  %v560_v25 = vshrl.u32 %v981_v32, %v557_v48  ;;  %v563_v52 = vshrl.u32 %v982_v34, %v557_v48 }
  0x77   :  { %v410_v50 = vxor.u32 2147483648, %v409_v43  ;;  %v566_v20 = vshrl.u32 %v983_v36, %v557_v48  ;;  %v568_v40 = vshll.u32 %v983_v36, %v556_v24  ;;  %v569_v61 = vshrl.u32 %v984_v38, %v557_v48 }
  0x78   :  { %v1418_v59 = vsub.s32 %v494_v16, %v497_v5  ;;  %v899_v63 = vadd.s32 4294967169, %v654_v4  ;;  %v558_v31 = vshrl.u32 %v980_v30, %v557_v48  ;;  %v561_v55 = vor.u32 %v560_v25, %v559_v49 }
  0x79   :  { %v411_v58 = vsel %vm328_vm15, %v410_v50, %v409_v43  ;;  %vm574_vm7 = vcmp.lt.s32.totalorder %v555_v47, 1  ;;  %v564_v7 = vor.u32 %v563_v52, %v562_v19  ;;  %v567_v57 = vor.u32 %v566_v20, %v565_v51 }
  0x7a   :  { %v414_v2 = vsel %vm1374_vm1, %v1102_v62, %v411_v58  ;;  %v500_v3 = vsub.s32 0, %v1418_v59  ;;  %v570_v9 = vor.u32 %v569_v61, %v568_v40  ;;  %v571_v10 = vshll.u32 %v984_v38, %v556_v24 }
  0x7b   :  { %960 = vcosq.f32 %v414_v2  ;;  %v572_v15 = vshrl.u32 %v985_v46, %v557_v48  ;;  %v1428_v17 = vand.u32 3, %v419_v42  ;;  %v1431_v11 = vshll.u32 %v550_v45, 8 }
  0x7c   :  { %962 = vsinq.f32 %v414_v2  ;;  %v888_v18 = vmin.u32 %v500_v3, %v1418_v59  ;;  %v650_v21 = vand.u32 2147483647, %v1386_v1  ;;  %vm576_vm8 = vcmp.lt.s32.totalorder %v555_v47, 3 }
  0x7d   :  { %v573_v22 = vor.u32 %v572_v15, %v571_v10  ;;  %vm577_vm9 = vcmp.lt.s32.totalorder %v555_v47, 4  ;;  %v660_v23 = vadd.s32 1, %v899_v63  ;;  %vm575_vm10 = vcmp.lt.s32.totalorder %v555_v47, 2 }
  0x7e   :  { %v502_v26 = vclz %v888_v18  ;;  %v578_v13 = vsel %vm574_vm7, %v558_v31, %v561_v55  ;;  %v582_v53 = vsel %vm574_vm7, %v561_v55, %v564_v7  ;;  %v579_v56 = vsel %vm577_vm9, %v567_v57, 2102212464 }
  0x7f   :  { %v583_v60 = vsel %vm577_vm9, %v570_v9, 920167782  ;;  %v586_v16 = vsel %vm574_vm7, %v564_v7, %v567_v57  ;;  %v587_v6 = vsel %vm577_vm9, %v573_v22, 1326507024  ;;  %v580_v0 = vsel %vm576_vm8, %v564_v7, %v579_v56 }
  0x80   :  { %v889_v35 = vadd.s32 4294967294, %v502_v26  ;;  %v584_v33 = vsel %vm576_vm8, %v567_v57, %v583_v60  ;;  %v588_v39 = vsel %vm576_vm8, %v570_v9, %v587_v6  ;;  %v490_v29 = vadd.s32 %v1365_v28, %v1363_v29 }
  0x81   :  { %v585_v28 = vsel %vm575_vm10, %v582_v53, %v584_v33  ;;  %v589_v41 = vsel %vm575_vm10, %v586_v16, %v588_v39  ;;  %vm661_vm11 = vcmp.gt.s32.totalorder %v660_v23, 0  ;;  %vm418_vm12 = vweird.f32 %v1102_v62 }
  0x82   :  { %vm890_vm13 = vcmp.lt.s32.totalorder %v889_v35, 0  ;;  %v581_v37 = vsel %vm575_vm10, %v578_v13, %v580_v0  ;;  %v1444_v42 = vmul.u32.u64.low %v1431_v11, %v589_v41  ;;  %v1445_v24 = vmul.u32.u64.high %v1431_v11, %v589_v41, %v1444_v42 }
  0x83   :  { %v505_v8 = vsel %vm890_vm13, 0, %v889_v35  ;;  %v1448_v43 = vmul.u32.u64.low %v1431_v11, %v585_v28  ;;  %v1449_v4 = vmul.u32.u64.high %v1431_v11, %v585_v28, %v1448_v43  ;;  %v662_v45 = vsel %vm661_vm11, %v660_v23, 0 }
  0x84   :  { %vm421_vm14 = vcmp.lt.s32.totalorder %v1428_v17, 2  ;;  %vm436_vm15 = vcmp.lt.s32.totalorder %v1214_v54, 0  ;;  %v506_v47 = vsub.s32 32, %v505_v8  ;;  %v507_v48 = vshll.u32 %v1418_v59, %v505_v8 }
  0x85   :  { %v510_v49 = vsub.s32 4294967266, %v505_v8  ;;  %vm422_vm0 = vcmp.eq.s32.totalorder %v1428_v17, 0  ;;  %vm425_vm1 = vcmp.eq.s32.totalorder %v1428_v17, 2  ;;  %v657_v50 = vand.u32 8388607, %v650_v21 }
  0x86   :  { %v664_v5 = vand.u32 31, %v662_v45  ;;  %v508_v19 = vshrl.u32 %v490_v29, %v506_v47  ;;  %v597_v25 = vmul.u32 %v1431_v11, %v581_v37  ;;  %vm599_vm2 = vc.u32 %v1445_v24, %v1448_v43 }
  0x87   :  { %v511_v51 = vadd.s32 127, %v510_v49  ;;  %v520_v20 = vsub.s32 4, %v1403_v44  ;;  %v600_v40 = vadd.s32 1, %v1449_v4  ;;  %v1464_v58 = vshrl.u32 %v662_v45, 5 }
  0x88   :  { %v961_v52 = vpop.eup %960  ;;  %v665_v59 = vsub.s32 32, %v664_v5  ;;  %vm1468_vm3 = vcmp.le.f32.partialorder %v434_v27, 0.7853982  ;;  %v509_v2 = vor.u32 %v508_v19, %v507_v48  ;;  %v667_v55 = vshll.u32 %v980_v30, %v664_v5 }
  0x89   :  { %v963_v61 = vpop.eup %962  ;;  %v426_v63 = vxor.u32 2147483648, %v961_v52  ;;  %v512_v31 = vshll.u32 %v511_v51, 23  ;;  %v601_v7 = vsel %vm599_vm2, %v600_v40, %v1449_v4  ;;  %v670_v57 = vshll.u32 %v981_v32, %v664_v5 }
  0x8a   :  { %v423_v3 = vxor.u32 2147483648, %v963_v61  ;;  %v673_v9 = vshll.u32 %v982_v34, %v664_v5  ;;  %v516_v18 = vcvt.s32.f32 %v509_v2  ;;  %v602_v11 = vadd.s32 %v601_v7, %v597_v25 }
  0x8b   :  { %v427_v10 = vsel %vm425_vm1, %v426_v63, %v963_v61  ;;  %v513_v15 = vor.u32 4788187, %v512_v31  ;;  %v668_v23 = vshrl.u32 %v981_v32, %v665_v59  ;;  %v671_v26 = vshrl.u32 %v982_v34, %v665_v59 }
  0x8c   :  { %v424_v22 = vsel %vm422_vm0, %v961_v52, %v423_v3  ;;  %v674_v13 = vshrl.u32 %v983_v36, %v665_v59  ;;  %v603_v56 = vadd.s32 536870912, %v602_v11  ;;  %v676_v60 = vshll.u32 %v983_v36, %v664_v5 }
  0x8d   :  { %v428_v17 = vsel %vm421_vm14, %v424_v22, %v427_v10  ;;  %v514_v53 = vand.u32 2147483647, %v513_v15  ;;  %v521_v44 = vsel %vm436_vm15, %v520_v20, %v1403_v44  ;;  %v658_v16 = vor.u32 8388608, %v657_v50 }
  0x8e   :  { %v429_v62 = vsel %vm418_vm12, nan, %v428_v17  ;;  %v677_v6 = vshrl.u32 %v984_v38, %v665_v59  ;;  %v1495_v0 = vshrl.u32 %v603_v56, 30  ;;  %v679_v33 = vshll.u32 %v984_v38, %v664_v5 }
  0x8f   :  { %885 = vst [vmem:[%s1648_s1 + $0x30] sm:$0xff] %v429_v62  ;;  %v517_v35 = vmul.f32 %v516_v18, %v514_v53  ;;  %v680_v39 = vshrl.u32 %v985_v46, %v665_v59  ;;  %v666_v29 = vshrl.u32 %v980_v30, %v665_v59  ;;  %v669_v28 = vor.u32 %v668_v23, %v667_v55  ;;  %v1535_v55 = vld [vmem:[%s1647_s0 + $0x38] sm:$0xff] }
  0x90   :  { %v672_v41 = vor.u32 %v671_v26, %v670_v57  ;;  %v678_v37 = vor.u32 %v677_v6, %v676_v60  ;;  %v605_v8 = vshll.u32 %v1495_v0, 30  ;;  %v675_v4 = vor.u32 %v674_v13, %v673_v9 }
  0x91   :  { %v518_v42 = vxor.u32 2147483648, %v517_v35  ;;  %vm682_vm4 = vcmp.lt.s32.totalorder %v1464_v58, 1  ;;  %v523_v45 = vsel %vm1468_vm3, 0, %v521_v44  ;;  %v681_v47 = vor.u32 %v680_v39, %v679_v33 }
  0x92   :  { %vm685_vm5 = vcmp.lt.s32.totalorder %v1464_v58, 4  ;;  %v698_v48 = vshll.u32 %v658_v16, 8  ;;  %v606_v50 = vsub.s32 %v602_v11, %v605_v8  ;;  %vm684_vm6 = vcmp.lt.s32.totalorder %v1464_v58, 3 }
  0x93   :  { %v519_v49 = vsel %vm436_vm15, %v518_v42, %v517_v35  ;;  %v687_v5 = vsel %vm685_vm5, %v675_v4, 2102212464  ;;  %vm683_vm7 = vcmp.lt.s32.totalorder %v1464_v58, 2  ;;  %v690_v51 = vsel %vm682_vm4, %v669_v28, %v672_v41 }
  0x94   :  { %v522_v19 = vsel %vm1468_vm3, %v1214_v54, %v519_v49  ;;  %v691_v25 = vsel %vm685_vm5, %v678_v37, 920167782  ;;  %v608_v52 = vsub.s32 0, %v606_v50  ;;  %v686_v20 = vsel %vm682_vm4, %v666_v29, %v669_v28 }
  0x95   :  { %964 = vcosq.f32 %v522_v19  ;;  %v694_v40 = vsel %vm682_vm4, %v672_v41, %v675_v4  ;;  %v688_v59 = vsel %vm684_vm6, %v672_v41, %v687_v5  ;;  %v692_v61 = vsel %vm684_vm6, %v675_v4, %v691_v25 }
  0x96   :  { %966 = vsinq.f32 %v522_v19  ;;  %v695_v63 = vsel %vm685_vm5, %v681_v47, 1326507024  ;;  %v894_v27 = vmin.u32 %v608_v52, %v606_v50  ;;  %v693_v2 = vsel %vm683_vm7, %v690_v51, %v692_v61 }
  0x97   :  { %v696_v31 = vsel %vm684_vm6, %v678_v37, %v695_v63  ;;  %v1539_v7 = vmul.u32.u64.low %v698_v48, %v693_v2  ;;  %v1540_v57 = vmul.u32.u64.high %v698_v48, %v693_v2, %v1539_v7  ;;  %v527_v9 = vadd.s32 3, %v523_v45 }
  0x98   :  { %v697_v3 = vsel %vm683_vm7, %v694_v40, %v696_v31  ;;  %v610_v10 = vclz %v894_v27  ;;  %v689_v58 = vsel %vm683_vm7, %v686_v20, %v688_v59  ;;  %v761_v11 = vand.u32 2139095040, %v1535_v55 }
  0x99   :  { %v1545_v15 = vmul.u32.u64.low %v698_v48, %v697_v3  ;;  %v1546_v18 = vmul.u32.u64.high %v698_v48, %v697_v3, %v1545_v15  ;;  %v705_v23 = vmul.u32 %v698_v48, %v689_v58  ;;  %v708_v26 = vadd.s32 1, %v1540_v57 }
  0x9a   :  { %v895_v22 = vadd.s32 4294967294, %v610_v10  ;;  %v762_v13 = vshrl.u32 %v761_v11, 23  ;;  %v528_v17 = vand.u32 3, %v527_v9  ;;  %v598_v24 = vadd.s32 %v1448_v43, %v1445_v24 }
  0x9b   :  { %vm707_vm9 = vc.u32 %v1546_v18, %v1539_v7  ;;  %v758_v28 = vand.u32 2147483647, %v1535_v55  ;;  %v628_v47 = vsub.s32 4, %v1495_v0  ;;  %vm526_vm14 = vweird.f32 %v1214_v54 }
  0x9c   :  { %vm896_vm8 = vcmp.lt.s32.totalorder %v895_v22, 0  ;;  %v905_v53 = vadd.s32 4294967169, %v762_v13  ;;  %v709_v44 = vsel %vm707_vm9, %v708_v26, %v1540_v57  ;;  %vm529_vm10 = vcmp.lt.s32.totalorder %v528_v17, 2 }
  0x9d   :  { %v613_v43 = vsel %vm896_vm8, 0, %v895_v22  ;;  %v710_v16 = vadd.s32 %v709_v44, %v705_v23  ;;  %vm530_vm11 = vcmp.eq.s32.totalorder %v528_v17, 0  ;;  %vm533_vm12 = vcmp.eq.s32.totalorder %v528_v17, 2 }
  0x9e   :  { %v614_v56 = vsub.s32 32, %v613_v43  ;;  %v615_v60 = vshll.u32 %v606_v50, %v613_v43  ;;  %v618_v62 = vsub.s32 4294967266, %v613_v43  ;;  %v768_v6 = vadd.s32 1, %v905_v53 }
  0x9f   :  { %v711_v29 = vadd.s32 536870912, %v710_v16  ;;  %vm544_vm15 = vcmp.lt.s32.totalorder %v1350_v14, 0  ;;  %vm1566_vm0 = vcmp.le.f32.partialorder %v542_v12, 0.7853982  ;;  %v765_v40 = vand.u32 8388607, %v758_v28 }
  0xa0   :  { %v616_v35 = vshrl.u32 %v598_v24, %v614_v56  ;;  %v619_v33 = vadd.s32 127, %v618_v62  ;;  %vm769_vm13 = vcmp.gt.s32.totalorder %v768_v6, 0  ;;  %v629_v0 = vsel %vm544_vm15, %v628_v47, %v1495_v0 }
  0xa1   :  { %v770_v4 = vsel %vm769_vm13, %v768_v6, 0  ;;  %v1557_v48 = vshrl.u32 %v711_v29, 30  ;;  %v631_v58 = vsel %vm1566_vm0, 0, %v629_v0  ;;  %v766_v15 = vor.u32 8388608, %v765_v40 }
  0xa2   :  { %v965_v39 = vpop.eup %964  ;;  %v617_v42 = vor.u32 %v616_v35, %v615_v60  ;;  %v620_v8 = vshll.u32 %v619_v33, 23  ;;  %v772_v49 = vand.u32 31, %v770_v4  ;;  %v771_v57 = vshrl.u32 %v770_v4, 5 }
  0xa3   :  { %v967_v41 = vpop.eup %966  ;;  %v534_v37 = vxor.u32 2147483648, %v965_v39  ;;  %v713_v51 = vshll.u32 %v1557_v48, 30  ;;  %v706_v7 = vadd.s32 %v1539_v7, %v1546_v18  ;;  %v806_v60 = vshll.u32 %v766_v15, 8 }
  0xa4   :  { %v531_v45 = vxor.u32 2147483648, %v967_v41  ;;  %v621_v50 = vor.u32 4788187, %v620_v8  ;;  %v624_v5 = vcvt.s32.f32 %v617_v42  ;;  %v773_v25 = vsub.s32 32, %v772_v49 }
  0xa5   :  { %v535_v54 = vsel %vm533_vm12, %v534_v37, %v967_v41  ;;  %v714_v61 = vsub.s32 %v710_v16, %v713_v51  ;;  %v775_v63 = vshll.u32 %v980_v30, %v772_v49  ;;  %vm790_vm1 = vcmp.lt.s32.totalorder %v771_v57, 1 }
  0xa6   :  { %v532_v19 = vsel %vm530_vm11, %v965_v39, %v531_v45  ;;  %v622_v20 = vand.u32 2147483647, %v621_v50  ;;  %v776_v2 = vshrl.u32 %v981_v32, %v773_v25  ;;  %v778_v32 = vshll.u32 %v981_v32, %v772_v49 }
  0xa7   :  { %v536_v52 = vsel %vm529_vm10, %v532_v19, %v535_v54  ;;  %v779_v31 = vshrl.u32 %v982_v34, %v773_v25  ;;  %v716_v3 = vsub.s32 0, %v714_v61  ;;  %v781_v34 = vshll.u32 %v982_v34, %v772_v49 }
  0xa8   :  { %v537_v59 = vsel %vm526_vm14, nan, %v536_v52  ;;  %v625_v27 = vmul.f32 %v624_v5, %v622_v20  ;;  %v782_v9 = vshrl.u32 %v983_v36, %v773_v25  ;;  %v784_v36 = vshll.u32 %v983_v36, %v772_v49 }
  0xa9   :  { %891 = vst [vmem:[%s1648_s1 + $0x8] sm:$0xff] %v537_v59  ;;  %v900_v11 = vmin.u32 %v716_v3, %v714_v61  ;;  %v774_v30 = vshrl.u32 %v980_v30, %v773_v25  ;;  %v777_v22 = vor.u32 %v776_v2, %v775_v63  ;;  %v785_v23 = vshrl.u32 %v984_v38, %v773_v25 }
  0xaa   :  { %v626_v10 = vxor.u32 2147483648, %v625_v27  ;;  %v780_v13 = vor.u32 %v779_v31, %v778_v32  ;;  %v787_v38 = vshll.u32 %v984_v38, %v772_v49  ;;  %v788_v46 = vshrl.u32 %v985_v46, %v773_v25 }
  0xab   :  { %v718_v24 = vclz %v900_v11  ;;  %v783_v43 = vor.u32 %v782_v9, %v781_v34  ;;  %v786_v18 = vor.u32 %v785_v23, %v784_v36  ;;  %vm792_vm2 = vcmp.lt.s32.totalorder %v771_v57, 3 }
  0xac   :  { %v627_v26 = vsel %vm544_vm15, %v626_v10, %v625_v27  ;;  %v789_v53 = vor.u32 %v788_v46, %v787_v38  ;;  %vm791_vm3 = vcmp.lt.s32.totalorder %v771_v57, 2  ;;  %vm793_vm4 = vcmp.lt.s32.totalorder %v771_v57, 4 }
  0xad   :  { %v630_v17 = vsel %vm1566_vm0, %v1350_v14, %v627_v26  ;;  %v901_v56 = vadd.s32 4294967294, %v718_v24  ;;  %v794_v62 = vsel %vm790_vm1, %v774_v30, %v777_v22  ;;  %v798_v44 = vsel %vm790_vm1, %v777_v22, %v780_v13 }
  0xae   :  { %968 = vcosq.f32 %v630_v17  ;;  %v795_v16 = vsel %vm793_vm4, %v783_v43, 2102212464  ;;  %v799_v6 = vsel %vm793_vm4, %v786_v18, 920167782  ;;  %v802_v35 = vsel %vm790_vm1, %v780_v13, %v783_v43 }
  0xaf   :  { %970 = vsinq.f32 %v630_v17  ;;  %vm902_vm5 = vcmp.lt.s32.totalorder %v901_v56, 0  ;;  %v796_v39 = vsel %vm792_vm2, %v780_v13, %v795_v16  ;;  %v800_v29 = vsel %vm792_vm2, %v783_v43, %v799_v6 }
  0xb0   :  { %v721_v33 = vsel %vm902_vm5, 0, %v901_v56  ;;  %v803_v41 = vsel %vm793_vm4, %v789_v53, 1326507024  ;;  %v635_v37 = vadd.s32 3, %v631_v58  ;;  %v801_v45 = vsel %vm791_vm3, %v798_v44, %v800_v29 }
  0xb1   :  { %v722_v42 = vsub.s32 32, %v721_v33  ;;  %v723_v8 = vshll.u32 %v714_v61, %v721_v33  ;;  %v726_v4 = vsub.s32 4294967266, %v721_v33  ;;  %v804_v47 = vsel %vm792_vm2, %v786_v18, %v803_v41 }
  0xb2   :  { %v797_v50 = vsel %vm791_vm3, %v794_v62, %v796_v39  ;;  %v805_v5 = vsel %vm791_vm3, %v802_v35, %v804_v47  ;;  %v1610_v25 = vmul.u32.u64.low %v806_v60, %v801_v45  ;;  %v1611_v52 = vmul.u32.u64.high %v806_v60, %v801_v45, %v1610_v25 }
  0xb3   :  { %v724_v49 = vshrl.u32 %v706_v7, %v722_v42  ;;  %v727_v54 = vadd.s32 127, %v726_v4  ;;  %v1607_v19 = vmul.u32.u64.low %v806_v60, %v805_v5  ;;  %v1608_v51 = vmul.u32.u64.high %v806_v60, %v805_v5, %v1607_v19 }
  0xb4   :  { %v636_v12 = vand.u32 3, %v635_v37  ;;  %v813_v61 = vmul.u32 %v806_v60, %v797_v50  ;;  %v816_v63 = vadd.s32 1, %v1611_v52  ;;  %vm634_vm10 = vweird.f32 %v1350_v14 }
  0xb5   :  { %v725_v20 = vor.u32 %v724_v49, %v723_v8  ;;  %v728_v40 = vshll.u32 %v727_v54, 23  ;;  %vm815_vm6 = vc.u32 %v1608_v51, %v1610_v25  ;;  %vm652_vm11 = vcmp.lt.s32.totalorder %v1386_v1, 0 }
  0xb6   :  { %vm641_vm7 = vcmp.eq.s32.totalorder %v636_v12, 2  ;;  %vm638_vm8 = vcmp.eq.s32.totalorder %v636_v12, 0  ;;  %v817_v3 = vsel %vm815_vm6, %v816_v63, %v1611_v52  ;;  %vm637_vm9 = vcmp.lt.s32.totalorder %v636_v12, 2 }
  0xb7   :  { %v729_v59 = vor.u32 4788187, %v728_v40  ;;  %v732_v0 = vcvt.s32.f32 %v725_v20  ;;  %v818_v9 = vadd.s32 %v817_v3, %v813_v61  ;;  %v736_v10 = vsub.s32 4, %v1557_v48 }
  0xb8   :  { %vm1621_vm12 = vcmp.le.f32.partialorder %v650_v21, 0.7853982  ;;  %v814_v56 = vadd.s32 %v1610_v25, %v1608_v51  ;;  %vm742_vm1 = vweird.f32 %v1386_v1  ;;  %vm760_vm2 = vcmp.lt.s32.totalorder %v1535_v55, 0 }
  0xb9   :  { %v730_v2 = vand.u32 2147483647, %v729_v59  ;;  %v819_v36 = vadd.s32 536870912, %v818_v9  ;;  %v737_v48 = vsel %vm652_vm11, %v736_v10, %v1557_v48  ;;  %vm759_vm3 = vcmp.le.f32.partialorder %v758_v28, 0.7853982 }
  0xba   :  { %v739_v38 = vsel %vm1621_vm12, 0, %v737_v48 }
  0xbb   :  { %v969_v27 = vpop.eup %968  ;;  %v733_v34 = vmul.f32 %v732_v0, %v730_v2  ;;  %v820_v23 = vshrl.u32 %v819_v36, 30  ;;  %v743_v24 = vadd.s32 3, %v739_v38 }
  0xbc   :  { %v971_v32 = vpop.eup %970  ;;  %v642_v31 = vxor.u32 2147483648, %v969_v27 }
  0xbd   :  { %v639_v57 = vxor.u32 2147483648, %v971_v32  ;;  %v734_v15 = vxor.u32 2147483648, %v733_v34  ;;  %v821_v13 = vshll.u32 %v820_v23, 30  ;;  %v744_v18 = vand.u32 3, %v743_v24 }
  0xbe   :  { %v643_v14 = vsel %vm641_vm7, %v642_v31, %v971_v32  ;;  %v844_v5 = vsub.s32 4, %v820_v23  ;;  %vm850_vm7 = vweird.f32 %v1535_v55 }
  0xbf   :  { %v640_v58 = vsel %vm638_vm8, %v969_v27, %v639_v57  ;;  %v735_v22 = vsel %vm652_vm11, %v734_v15, %v733_v34  ;;  %v822_v46 = vsub.s32 %v818_v9, %v821_v13  ;;  %vm746_vm14 = vcmp.eq.s32.totalorder %v744_v18, 0 }
  0xc0   :  { %v644_v11 = vsel %vm637_vm9, %v640_v58, %v643_v14  ;;  %v738_v26 = vsel %vm1621_vm12, %v1386_v1, %v735_v22  ;;  %vm749_vm15 = vcmp.eq.s32.totalorder %v744_v18, 2  ;;  %vm745_vm0 = vcmp.lt.s32.totalorder %v744_v18, 2 }
  0xc1   :  { %v645_v30 = vsel %vm634_vm10, nan, %v644_v11  ;;  %972 = vcosq.f32 %v738_v26  ;;  %v824_v17 = vsub.s32 0, %v822_v46  ;;  %v845_v51 = vsel %vm760_vm2, %v844_v5, %v820_v23 }
  0xc2   :  { %897 = vst [vmem:[%s1648_s1 + $0x18] sm:$0xff] %v645_v30  ;;  %974 = vsinq.f32 %v738_v26  ;;  %v847_v52 = vsel %vm759_vm3, 0, %v845_v51 }
  0xc3   :  { %v906_v43 = vmin.u32 %v824_v17, %v822_v46  ;;  %v851_v12 = vadd.s32 3, %v847_v52 }
  0xc5   :  { %v826_v7 = vclz %v906_v43  ;;  %v852_v20 = vand.u32 3, %v851_v12 }
  0xc7   :  { %v907_v53 = vadd.s32 4294967294, %v826_v7  ;;  %vm857_vm4 = vcmp.eq.s32.totalorder %v852_v20, 2  ;;  %vm854_vm5 = vcmp.eq.s32.totalorder %v852_v20, 0  ;;  %vm853_vm6 = vcmp.lt.s32.totalorder %v852_v20, 2 }
  0xc9   :  { %vm908_vm13 = vcmp.lt.s32.totalorder %v907_v53, 0 }
  0xca   :  { %v829_v62 = vsel %vm908_vm13, 0, %v907_v53 }
  0xcb   :  { %v830_v6 = vsub.s32 32, %v829_v62  ;;  %v831_v35 = vshll.u32 %v822_v46, %v829_v62  ;;  %v834_v33 = vsub.s32 4294967266, %v829_v62 }
  0xcd   :  { %v832_v29 = vshrl.u32 %v814_v56, %v830_v6  ;;  %v835_v41 = vadd.s32 127, %v834_v33 }
  0xce   :  { %v973_v60 = vpop.eup %972 }
  0xcf   :  { %v975_v44 = vpop.eup %974  ;;  %v750_v16 = vxor.u32 2147483648, %v973_v60  ;;  %v833_v8 = vor.u32 %v832_v29, %v831_v35  ;;  %v836_v4 = vshll.u32 %v835_v41, 23 }
  0xd0   :  { %v747_v39 = vxor.u32 2147483648, %v975_v44 }
  0xd1   :  { %v751_v1 = vsel %vm749_vm15, %v750_v16, %v975_v44  ;;  %v837_v47 = vor.u32 4788187, %v836_v4  ;;  %v840_v49 = vcvt.s32.f32 %v833_v8 }
  0xd2   :  { %v748_v37 = vsel %vm746_vm14, %v973_v60, %v747_v39 }
  0xd3   :  { %v752_v42 = vsel %vm745_vm0, %v748_v37, %v751_v1  ;;  %v838_v54 = vand.u32 2147483647, %v837_v47 }
  0xd4   :  { %v753_v45 = vsel %vm742_vm1, nan, %v752_v42 }
  0xd5   :  { %903 = vst [vmem:[%s1648_s1 + $0x28] sm:$0xff] %v753_v45  ;;  %v841_v50 = vmul.f32 %v840_v49, %v838_v54 }
  0xd7   :  { %v842_v28 = vxor.u32 2147483648, %v841_v50 }
  0xd9   :  { %v843_v19 = vsel %vm760_vm2, %v842_v28, %v841_v50 }
  0xda   :  { %v846_v25 = vsel %vm759_vm3, %v1535_v55, %v843_v19 }
  0xdb   :  { %976 = vcosq.f32 %v846_v25 }
  0xdc   :  { %978 = vsinq.f32 %v846_v25 }
  0xe8   :  { %v977_v40 = vpop.eup %976 }
  0xe9   :  { %v979_v59 = vpop.eup %978  ;;  %v858_v0 = vxor.u32 2147483648, %v977_v40 }
  0xea   :  { %v855_v61 = vxor.u32 2147483648, %v979_v59 }
  0xeb   :  { %v859_v55 = vsel %vm857_vm4, %v858_v0, %v979_v59 }
  0xec   :  { %v856_v63 = vsel %vm854_vm5, %v977_v40, %v855_v61 }
  0xed   :  { %v860_v27 = vsel %vm853_vm6, %v856_v63, %v859_v55 }
  0xee   :  { %v861_v2 = vsel %vm850_vm7, nan, %v860_v27 }
  0xef   :  { %909 = vst [vmem:[%s1648_s1 + $0x38] sm:$0xff] %v861_v2 }

// kernel: dnn_forward.1
= control target key start
LH: loop header
LB: loop body
LE: loop exit
PB: predicated region body
PF: predicated region fallthrough
CT: control target
= control target key end

     0   :  { %s3697_s0 = inlined_call_operand.vmem [shape: f32[4,20,17], index: 0, kind: input, shape index: {}]   ;;  %s3698_s1 = inlined_call_operand.vmem [shape: f32[4,2,16,17], index: 1, kind: input, shape index: {}]   ;;  %s3699_s2 = inlined_call_operand.vmem [shape: f32[1,17], index: 2, kind: input, shape index: {}]   ;;  %s3700_s3 = inlined_call_operand.vmem [shape: f32[1,17], index: 3, kind: input, shape index: {}]   ;;  %s3701_s4 = inlined_call_operand.vmem [shape: f32[5,17,64], index: 4, kind: input, shape index: {}]   ;;  %s3702_s5 = inlined_call_operand.vmem [shape: f32[1,64], index: 5, kind: input, shape index: {}]   ;;  %s3703_s6 = inlined_call_operand.vmem [shape: f32[64,64], index: 6, kind: input, shape index: {}]   ;;  %s3704_s7 = inlined_call_operand.vmem [shape: f32[1,64], index: 7, kind: input, shape index: {}]   ;;  %s3705_s8 = inlined_call_operand.vmem [shape: f32[64,64], index: 8, kind: input, shape index: {}]   ;;  %s3706_s9 = inlined_call_operand.vmem [shape: f32[1,64], index: 9, kind: input, shape index: {}]   ;;  %s3707_s10 = inlined_call_operand.vmem [shape: f32[5,17,64], index: 10, kind: input, shape index: {}]   ;;  %s3708_s11 = inlined_call_operand.vmem [shape: f32[1,64], index: 11, kind: input, shape index: {}]   ;;  %s3709_s12 = inlined_call_operand.vmem [shape: f32[64,64], index: 12, kind: input, shape index: {}]   ;;  %s3710_s13 = inlined_call_operand.vmem [shape: f32[1,64], index: 13, kind: input, shape index: {}]   ;;  %s3711_s14 = inlined_call_operand.vmem [shape: f32[64,64], index: 14, kind: input, shape index: {}]   ;;  %s3712_s15 = inlined_call_operand.vmem [shape: f32[1,64], index: 15, kind: input, shape index: {}]   ;;  %s3713_s16 = inlined_call_operand.vmem [shape: f32[64,17], index: 16, kind: input, shape index: {}]   ;;  %s3714_s17 = inlined_call_operand.vmem [shape: f32[1,17], index: 17, kind: input, shape index: {}]   ;;  %s3715_s18 = inlined_call_operand.vmem [shape: f32[4], index: 18, kind: input, shape index: {}]   ;;  %s3716_s19 = inlined_call_operand.vmem [shape: f32[4,16,17], index: 19, kind: output, shape index: {}]  }
   0x1   :  { %3721 = sst [smem:[#allocation8_spill]] %s3697_s0 }
   0x2   :  { %3722 = sst [smem:[#allocation9_spill]] %s3698_s1 }
   0x3   :  { %3723 = sst [smem:[#allocation10_spill]] %s3699_s2 }
   0x4   :  { %3724 = sst [smem:[#allocation11_spill]] %s3700_s3 }
   0x5   :  { %3725 = sst [smem:[#allocation12_spill]] %s3708_s11 }
   0x6   :  { %3726 = sst [smem:[#allocation13_spill]] %s3710_s13 }
   0x7   :  { %3727 = sst [smem:[#allocation14_spill]] %s3711_s14 }
   0x8   :  { %3728 = sst [smem:[#allocation15_spill]] %s3712_s15 }
   0x9   :  { %3729 = sst [smem:[#allocation16_spill]] %s3714_s17 }
   0xa   :  { %3730 = sst [smem:[#allocation17_spill]] %s3715_s18 }
   0xb   :  { %3731 = sst [smem:[#allocation18_spill]] %s3716_s19 }
   0xc   :  { %24 = vsyncpa [#allocation4], 0  ;;  %s3037_s0 = smov 0   ;;  %s3039_s30 = smov 0  }
   0xd   :  { %s3041_s20 = smov 0   ;;  %s3043_s21 = smov 0  }
   0xe   :  { %s3045_s1 = smov 0   ;;  %s3047_s22 = smov 0  }
   0xf   :  { %s3049_s2 = smov 0  }
  0x10 LB: > { %s2342_s23 = sadd.s32 4294967295, %s2932_s2   ;;  %s39_s24 = sadd.s32 1, %s2924_s1  ;;  %s2932_s2 = sphi %s3049_s2, %s30_s2   ;;  %s2928_s22 = sphi %s3047_s22, %s3756_s22   ;;  %s2924_s1 = sphi %s3045_s1, %s3755_s1   ;;  %s2920_s21 = sphi %s3043_s21, %s3754_s21   ;;  %s2916_s20 = sphi %s3041_s20, %s3753_s20   ;;  %s2912_s30 = sphi %s3039_s30, %s3752_s30   ;;  %s2908_s0 = sphi %s3037_s0, %s3751_s0  }
  0x11   : > { %p40_p0 = scmp.ge.s32.totalorder %s39_s24, 2  ;;  %s42_s25 = sadd.s32 1, %s2928_s22 }
  0x12   : > { %s77_s3 = sadd.s32 1, %s2912_s30  ;;  %p84_p1 = scmp.ne.s32.totalorder %s2912_s30, %s2908_s0 }
  0x13   : > { %s3758_s24 = smov (%p40_p0, %s39_s24), 0  ;;  %s3760_s25 = smov (!%p40_p0, %s42_s25), %s2928_s22 }
  0x14   : > { %3732 = sst [smem:[#allocation6_spill]] %s3758_s24  ;;  %s73_s26 = ssub.s32 %s2924_s1, %s3758_s24 }
  0x15   : > { %p85_p2 = scmp.eq.s32.totalorder %s2932_s2, 0  ;;  %p44_p3 = scmp.ge.s32.totalorder %s3760_s25, 4 }
  0x16   : > { %p2344_p4 = scmp.ge.s32.totalorder %s2932_s2, 1  ;;  %p486_p6 = scmp.lt.s32.totalorder %s2932_s2, 9 }
  0x17   : > { %p3085_p5 = por %p85_p2, %p84_p1  ;;  %s3762_s25 = smov (%p44_p3, %s3760_s25), 0 }
  0x18   : > { %3734 = sst [smem:[#allocation7_spill]] %s3762_s25  ;;  %p3092_p7 = pnand %p2344_p4, %p486_p6 }
  0x19   : > { %s72_s29 = ssub.s32 %s2928_s22, %s3762_s25  ;;  %p3098_p8 = scmp.eq.s32.totalorder %s2342_s23, 0 }
  0x1a   : > { %s3735_s28 = scalar_select %p3092_p7, 1, 0 }
  0x1b   : > { %s74_s19 = sor.u32 %s73_s26, %s72_s29  ;;  %p2794_p9 = pneg %p3092_p7 }
  0x1c   : > { %p75_p10 = scmp.eq.s32.totalorder %s74_s19, 0  ;;  %s3737_s18 = sld [smem:[#allocation17_spill]] }
  0x1d   : > { %p2795_p11 = pnand %p3098_p8, %p2794_p9 }
  0x1e   : > { %s3110_s14 = scalar_select %p75_p10, %s2912_s30, %s77_s3  }
  0x1f   : > { %p2861_p13 = pneg %p2795_p11 }
  0x22   : > { %s547_s13 = sshll.u32 %s3737_s18, 4  ;;  %s548_s13 = int_to_ptr.vmem [resolvable:$true] %s547_s13 }
  0x23   : > { %s2859_s11 = scalar_lea.vmem %s548_s13, 16  ;;  %p2867_p2 = scmp.lt.s32.totalorder %s548_s13, %s548_s13 }
  0x24   : > { %p2860_p12 = scmp.ne.s32.totalorder %s548_s13, %s2859_s11  ;;  %p2868_p3 = scmp.lt.s32.totalorder %s2859_s11, %s2859_s11 }
  0x26   : > { %p2862_p0 = pnand %p2861_p13, %p2860_p12  ;;  %p2869_p4 = por %p2868_p3, %p2867_p2 }
  0x28   : > { %p2863_p1 = pneg %p2862_p0 }
  0x2a   : > { %p2870_p6 = pnand %p2869_p4, %p2863_p1 }
  0x2c   : > { %2873 = shalt.err (!%p2870_p6)
}
  0x2d   : > { %s2934_s19 = smov [#allocation3]   ;;  %p2346_p7 = scmp.ge.s32.totalorder %s2932_s2, 8 }
  0x2e   : > { %2797 = dma.vmem_to_smem (!%p2795_p11), %s548_s13, 16, %s2934_s19, [#allocation4]  }
  0x2f   : > { %554 = sbr.rel (%p2346_p7) target bundleno = 63 (0x3f), region = 84 }
  0x34   : > { %565 = sbr.rel (!%p3085_p5) target bundleno = 63 (0x3f), region = 92  ;;  %s567_s15 = sand.u32 (%p3085_p5), 1, %s2912_s30  }
  0x35   : > { %s2348_s17 = sshll.u32 (%p3085_p5), %s2928_s22, 2  ;;  %s2347_s23 = sshll.u32 (%p3085_p5), %s567_s15, 4 }
  0x36   : > { %s571_s3 = sadd.s32 (%p3085_p5), %s2924_s1, %s2348_s17  ;;  %s3738_s18 = sld [smem:[#allocation9_spill]] (%p3085_p5) }
  0x37   : > { %s2349_s26 = sshll.u32 (%p3085_p5), %s571_s3, 3  ;;  %s569_s13 = scalar_lea.vmem (%p3085_p5), [#allocation2], %s2347_s23 }
  0x3c   : > { %s573_s25 = scalar_lea.vmem %s3738_s18, %s2349_s26 }
  0x3d   : > { %v604_v0 = vld [vmem:[%s573_s25] sm:$0xff]  ;;  %v606_v1 = vld [vmem:[%s573_s25 + $0x10] sm:$0xff] }
  0x3e   : > { %605 = vst [vmem:[%s569_s13] sm:$0xff] %v604_v0  ;;  %607 = vst [vmem:[%s569_s13 + $0x8] sm:$0xff] %v606_v1 }
  0x3f PF: > { %p3739_p5 = scmp.ne.s32.totalorder %s3735_s28, 0 }
  0x40   : > { %s619_s27 = sand.u32 (!%p3739_p5), 1, %s2908_s0  }
  0x41   : > { %616 = sbr.rel (%p3739_p5) target bundleno = 1722 (0x6ba), region = 130  ;;  %s3124_s19 = sshll.u32 (!%p3739_p5), %s619_s27, 4 }
  0x42   : > { %s621_s15 = scalar_lea.vmem (!%p3739_p5), [#allocation2], %s3124_s19 }
  0x46   : > { %2903 = dma.done.wait (%p3098_p8), [#allocation4], 16  }
  0x47   : > { %2905 = vsyncadd (%p3098_p8), [#allocation4], 4294967280 }
  0x48   : > { %629 = sfence }
  0x49   : > { %v2361_v2 = vld [vmem:[%s3701_s4 + $0x28] sm:$0x1]  ;;  %vm747_vm0 = vcmask 1040384   ;;  %v2935_v3 = vmov 0.0   ;;  %v2360_v4 = vld [vmem:[%s3701_s4 + $0x20] sm:$0xff]  ;;  %p687_p7 = scmp.lt.s32.totalorder %s2920_s21, 3 }
  0x4a   : > { %2537 = vmatprep.subr.mxu1 %v2935_v3  ;;  %2555 = vmatprep.subr.mxu0 %v2935_v3  ;;  %vm2936_vm1 = vmmov 0   ;;  %v2359_v5 = vld [vmem:[%s3701_s4 + $0x18] sm:$0xff]  ;;  %v2368_v6 = vld [vmem:[%s3701_s4 + $0x40] sm:$0x1]  ;;  %s2356_s13 = sshll.u32 %s2916_s20, 3  ;;  %v2366_v8 = vld [vmem:[%s3701_s4 + $0x30] sm:$0xff] }
  0x4b   : > { %2538 = vmatpush3.msk.msra.mxu1 %vm747_vm0, %v2361_v2  ;;  %2543 = vmatprep.mubr.msk.f32.mxu1 %vm2936_vm1, %v2935_v3  ;;  %s3764_s21 = smov (!%p687_p7, %s2920_s21), 3  ;;  %v2367_v7 = vld [vmem:[%s3701_s4 + $0x38] sm:$0xff]  ;;  %s3740_s28 = sld [smem:[#allocation8_spill]]  ;;  %vm740_vm2 = vcmask 1046528   ;;  %vm744_vm3 = vcmask 138240   ;;  %vm900_vm4 = vcmask 1045504  }
  0x4c   : > { %2539 = vmatprep.subr.mxu1 %v2935_v3  ;;  %2561 = vmatprep.mubr.msk.f32.mxu0 %vm2936_vm1, %v2935_v3  ;;  %s2789_s29 = smul.u32 24, %s3764_s21  ;;  %s3741_s3 = sld [smem:[#allocation10_spill]]  ;;  %v733_v21 = vld [vmem:[%s3701_s4 + $0x10] sm:$0x1]  ;;  %v732_v25 = vld [vmem:[%s3701_s4 + $0x8] sm:$0xff]  ;;  %v731_v27 = vld [vmem:[%s3701_s4] sm:$0xff] }
  0x4d   : > { %2540 = vmatpush3.msra.mxu1 %v2360_v4  ;;  %2556 = vmatpush3.msk.msra.mxu0 %vm747_vm0, %v2368_v6  ;;  %s3742_s18 = sld [smem:[#allocation11_spill]]  ;;  %v2378_v24 = vld [vmem:[%s3701_s4 + $0x70] sm:$0x1]  ;;  %v2377_v26 = vld [vmem:[%s3701_s4 + $0x68] sm:$0xff]  ;;  %v2373_v30 = vld [vmem:[%s3701_s4 + $0x58] sm:$0x1] }
  0x4e   : > { %2541 = vmatprep.subr.mxu1 %v2935_v3  ;;  %2557 = vmatprep.subr.mxu0 %v2935_v3  ;;  %vm1068_vm5 = vcmask 1043456   ;;  %v2376_v31 = vld [vmem:[%s3701_s4 + $0x60] sm:$0xff]  ;;  %v2372_v34 = vld [vmem:[%s3701_s4 + $0x50] sm:$0xff]  ;;  %vm984_vm6 = vcmask 1044480   ;;  %v2371_v36 = vld [vmem:[%s3701_s4 + $0x48] sm:$0xff]  ;;  %vm1172_vm7 = vcmask 523264  }
  0x4f   : > { %2542 = vmatpush3.msra.mxu1 %v2359_v5  ;;  %2558 = vmatpush3.msra.mxu0 %v2367_v7  ;;  %v1164_v38 = vld [vmem:[%s3703_s6 + $0x38] sm:$0xff]  ;;  %v1163_v39 = vld [vmem:[%s3703_s6 + $0x30] sm:$0xff]  ;;  %v1162_v40 = vld [vmem:[%s3703_s6 + $0x28] sm:$0xff]  ;;  %s3744_s11 = sld [smem:[#allocation14_spill]]  ;;  %p694_p8 = scmp.lt.s32.totalorder %s2916_s20, 1 }
  0x50   : > { %2546 = vmatprep.subr.mxu1 %v2935_v3  ;;  %2559 = vmatprep.subr.mxu0 %v2935_v3  ;;  %v1161_v41 = vld [vmem:[%s3703_s6 + $0x20] sm:$0xff]  ;;  %v1160_v42 = vld [vmem:[%s3703_s6 + $0x18] sm:$0xff]  ;;  %v1159_v43 = vld [vmem:[%s3703_s6 + $0x10] sm:$0xff]  ;;  %s3746_s23 = sld [smem:[#allocation15_spill]] }
  0x51   : > { %s691_s24 = scalar_lea.vmem %s3740_s28, %s2789_s29  ;;  %2560 = vmatpush3.msra.mxu0 %v2366_v8  ;;  %v1158_v44 = vld [vmem:[%s3703_s6 + $0x8] sm:$0xff]  ;;  %v1157_v45 = vld [vmem:[%s3703_s6] sm:$0xff]  ;;  %v1254_v46 = vld [vmem:[%s3705_s8 + $0x38] sm:$0xff]  ;;  %s3745_s29 = sld [smem:[#allocation13_spill]] }
  0x52   : > { %v3173_v9 = vld [vmem:[%s3741_s3] ss:$0 sm:$0xff]  ;;  %s711_s26 = scalar_lea.vmem %s691_s24, %s2356_s13  ;;  %2573 = vmatprep.subr.mxu0 %v2935_v3  ;;  %v1253_v47 = vld [vmem:[%s3705_s8 + $0x30] sm:$0xff]  ;;  %v1252_v48 = vld [vmem:[%s3705_s8 + $0x28] sm:$0xff]  ;;  %s1416_s3 = sld [smem:[#allocation3]] }
  0x53   : > { %v712_v10 = vld [vmem:[%s711_s26] sm:$0xff]  ;;  %v713_v11 = vld [vmem:[%s711_s26 + $0x8] sm:$0xf]  ;;  %v1250_v50 = vld [vmem:[%s3705_s8 + $0x18] sm:$0xff]  ;;  %s2416_s13 = sld [smem:[#allocation3 + $0x2]]  ;;  %s3766_s20 = smov (!%p694_p8, %s2916_s20), 1 }
  0x54   : > { %v2358_v12 = vld [vmem:[%s3742_s18] ss:$0 sm:$0xff]  ;;  %v720_v13 = vsub.f32 %v712_v10, %v3173_v9  ;;  %v721_v14 = vsub.f32 %v713_v11, %v3173_v9  ;;  %v1249_v51 = vld [vmem:[%s3705_s8 + $0x10] sm:$0xff]  ;;  %v1248_v6 = vld [vmem:[%s3705_s8 + $0x8] sm:$0xff]  ;;  %s3747_s18 = sld [smem:[#allocation16_spill]] }
  0x55   : > { %v1251_v49 = vld [vmem:[%s3705_s8 + $0x20] sm:$0xff]  ;;  %v3309_v8 = vld [vmem:[%s3713_s16 + $0x38] sm:$0xff]  ;;  %v3314_v10 = vld [vmem:[%s3713_s16 + $0x30] sm:$0xff]  ;;  %s2417_s19 = sld [smem:[#allocation3 + $0x3]] }
  0x56   : > { %v729_v15 = vmul.f32 %v2358_v12, %v720_v13  ;;  %v730_v16 = vmul.f32 %v2358_v12, %v721_v14  ;;  %v2381_v0 = vld [vmem:[%s3702_s5] ss:$0 sm:$0xff]  ;;  %v3321_v11 = vld [vmem:[%s3713_s16 + $0x28] sm:$0xff]  ;;  %v3335_v13 = vld [vmem:[%s3713_s16 + $0x18] sm:$0xff]  ;;  %s3748_s17 = sld [smem:[#allocation18_spill]] }
  0x57   : > { %v1247_v7 = vld [vmem:[%s3705_s8] sm:$0xff]  ;;  %v3342_v14 = vld [vmem:[%s3713_s16 + $0x10] sm:$0xff] }
  0x58   : > { %v741_v17 = vrot.slane %v729_v15, 1  ;;  %v742_v18 = vrot.slane %v730_v16, 1  ;;  %v901_v19 = vrot.slane %v729_v15, 2  ;;  %v902_v20 = vrot.slane %v730_v16, 2  ;;  %v3328_v12 = vld [vmem:[%s3713_s16 + $0x20] sm:$0xff] }
  0x59   : > { %v1069_v28 = vrot.slane %v729_v15, 4  ;;  %v1070_v29 = vrot.slane %v730_v16, 4  ;;  %v985_v32 = vrot.slane %v729_v15, 3  ;;  %v986_v33 = vrot.slane %v730_v16, 3 }
  0x5a   : > { %v743_v22 = vsel %vm740_vm2, %v741_v17, %v742_v18  ;;  %v903_v23 = vsel %vm900_vm4, %v901_v19, %v902_v20  ;;  %v2394_v20 = vld [vmem:[%s3707_s10 + $0x58] sm:$0x1] }
  0x5b   : > { %2544 = vmatmul.mubr.msk.f32.vlgmr.msra.gmra.mxu1 %vm744_vm3, %v743_v22  ;;  %2562 = vmatmul.mubr.msk.f32.vlgmr.msra.gmra.mxu0 %vm744_vm3, %v903_v23  ;;  %v1071_v35 = vsel %vm1068_vm5, %v1069_v28, %v1070_v29  ;;  %v987_v37 = vsel %vm984_vm6, %v985_v32, %v986_v33  ;;  %v2392_v22 = vld [vmem:[%s3707_s10 + $0x48] sm:$0xff]  ;;  %v3415_v29 = vld [vmem:[%s3713_s16] sm:$0xff] }
  0x5c   : > { %2547 = vmatpush3.msk.msra.mxu1 %vm747_vm0, %v733_v21  ;;  %2552 = vmatprep.mubr.msk.f32.mxu1 %vm2936_vm1, %v2935_v3  ;;  %v2393_v21 = vld [vmem:[%s3707_s10 + $0x50] sm:$0xff]  ;;  %v3367_v23 = vld [vmem:[%s621_s15 + $0x8] sm:$0xff] }
  0x5d   : > { %2548 = vmatprep.subr.mxu1 %v2935_v3  ;;  %2574 = vmatpush3.msk.msra.mxu0 %vm747_vm0, %v2378_v24  ;;  %v3373_v24 = vld [vmem:[%s3707_s10 + $0x40] sm:$0x1]  ;;  %v3408_v28 = vld [vmem:[%s3713_s16 + $0x8] sm:$0xff] }
  0x5e   : > { %2549 = vmatpush3.msra.mxu1 %v732_v25  ;;  %2575 = vmatprep.subr.mxu0 %v2935_v3  ;;  %v3381_v25 = vld [vmem:[%s3707_s10 + $0x38] sm:$0xff] }
  0x5f   : > { %2550 = vmatprep.subr.mxu1 %v2935_v3  ;;  %2576 = vmatpush3.msra.mxu0 %v2377_v26  ;;  %v3391_v26 = vld [vmem:[%s3707_s10 + $0x30] sm:$0xff] }
  0x60   : > { %2551 = vmatpush3.msra.mxu1 %v731_v27  ;;  %2577 = vmatprep.subr.mxu0 %v2935_v3  ;;  %v3396_v27 = vld [vmem:[%s621_s15] sm:$0xff]  ;;  %s3743_s15 = sld [smem:[#allocation12_spill]] }
  0x61   : > { %2553 = vmatmul.mubr.msk.f32.vlgmr.msra.gmra.mxu1 %vm744_vm3, %v729_v15  ;;  %2564 = vmatprep.subr.mxu1 %v2935_v3  ;;  %v2382_v15 = vld [vmem:[%s3704_s7] ss:$0 sm:$0xff] }
  0x62   : > { %2565 = vmatpush3.msk.msra.mxu1 %vm747_vm0, %v2373_v30  ;;  %2570 = vmatprep.mubr.msk.f32.mxu1 %vm2936_vm1, %v2935_v3  ;;  %v2384_v30 = vld [vmem:[%s3706_s9] ss:$0 sm:$0xff] }
  0x63   : > { %2566 = vmatprep.subr.mxu1 %v2935_v3  ;;  %2578 = vmatpush3.msra.mxu0 %v2376_v31 }
  0x64   : > { %2567 = vmatpush3.msra.mxu1 %v2372_v34  ;;  %2579 = vmatprep.mubr.msk.f32.mxu0 %vm2936_vm1, %v2935_v3 }
  0x65   : > { %2568 = vmatprep.subr.mxu1 %v2935_v3  ;;  %2580 = vmatmul.mubr.msk.f32.vlgmr.msra.gmra.mxu0 %vm744_vm3, %v1071_v35  ;;  %v3425_v35 = vld [vmem:[%s3709_s12 + $0x38] sm:$0xff] }
  0x66   : > { %2569 = vmatpush3.msra.mxu1 %v2371_v36  ;;  %2601 = vmatprep.subr.mxu0 %v2935_v3  ;;  %v3431_v36 = vld [vmem:[%s3709_s12 + $0x30] sm:$0xff] }
  0x67   : > { %2571 = vmatmul.mubr.msk.f32.vlgmr.msra.gmra.mxu1 %vm744_vm3, %v987_v37  ;;  %2582 = vmatprep.subr.mxu1 %v2935_v3 }
  0x68   : > { %2598 = vmatprep.mubr.msk.f32.mxu1 %vm2936_vm1, %v2935_v3  ;;  %2617 = vmatprep.mubr.msk.f32.mxu0 %vm2936_vm1, %v2935_v3 }
  0x69   : > { %2583 = vmatpush3.msra.mxu1 %v1164_v38  ;;  %2602 = vmatpush3.msra.mxu0 %v1254_v46  ;;  %v3440_v38 = vld [vmem:[%s3709_s12 + $0x28] sm:$0xff] }
  0x6a   : > { %2584 = vmatprep.subr.mxu1 %v2935_v3  ;;  %2603 = vmatprep.subr.mxu0 %v2935_v3 }
  0x6b   : > { %2585 = vmatpush3.msra.mxu1 %v1163_v39  ;;  %2604 = vmatpush3.msra.mxu0 %v1253_v47 }
  0x6c   : > { %2586 = vmatprep.subr.mxu1 %v2935_v3  ;;  %2605 = vmatprep.subr.mxu0 %v2935_v3 }
  0x6d   : > { %2587 = vmatpush3.msra.mxu1 %v1162_v40  ;;  %2606 = vmatpush3.msra.mxu0 %v1252_v48  ;;  %v3447_v40 = vld [vmem:[%s3709_s12 + $0x20] sm:$0xff]  ;;  %v3474_v48 = vld [vmem:[%s3709_s12 + $0x8] sm:$0xff] }
  0x6e   : > { %2588 = vmatprep.subr.mxu1 %v2935_v3  ;;  %2607 = vmatprep.subr.mxu0 %v2935_v3 }
  0x6f   : > { %2589 = vmatpush3.msra.mxu1 %v1161_v41  ;;  %2608 = vmatpush3.msra.mxu0 %v1251_v49  ;;  %v3454_v41 = vld [vmem:[%s3709_s12 + $0x18] sm:$0xff]  ;;  %v3481_v49 = vld [vmem:[%s3709_s12] sm:$0xff] }
  0x70   : > { %2590 = vmatprep.subr.mxu1 %v2935_v3  ;;  %2609 = vmatprep.subr.mxu0 %v2935_v3 }
  0x71   : > { %2591 = vmatpush3.msra.mxu1 %v1160_v42  ;;  %2610 = vmatpush3.msra.mxu0 %v1250_v50 }
  0x72   : > { %2592 = vmatprep.subr.mxu1 %v2935_v3  ;;  %2611 = vmatprep.subr.mxu0 %v2935_v3 }
  0x73   : > { %2593 = vmatpush3.msra.mxu1 %v1159_v43  ;;  %2612 = vmatpush3.msra.mxu0 %v1249_v51  ;;  %v3459_v43 = vld [vmem:[%s3743_s15] ss:$0 sm:$0xff]  ;;  %v3509_v51 = vld [vmem:[%s3744_s11 + $0x38] sm:$0xff]  ;;  %s2354_s15 = sshll.u32 %s3764_s21, 1 }
  0x74   : > { %2594 = vmatprep.subr.mxu1 %v2935_v3  ;;  %2613 = vmatprep.subr.mxu0 %v2935_v3  ;;  %s697_s25 = sadd.s32 %s2354_s15, %s3766_s20 }
  0x75   : > { %2595 = vmatpush3.msra.mxu1 %v1158_v44  ;;  %2614 = vmatpush3.msra.mxu0 %v1248_v6  ;;  %v3620_v6 = vld [vmem:[%s3746_s23] ss:$0 sm:$0xff]  ;;  %s2355_s0 = sshll.u32 %s697_s25, 3 }
  0x76   : > { %2596 = vmatprep.subr.mxu1 %v2935_v3  ;;  %2615 = vmatprep.subr.mxu0 %v2935_v3  ;;  %s699_s23 = scalar_lea.vmem %s3748_s17, %s2355_s0 }
  0x77   : > { %2597 = vmatpush3.msra.mxu1 %v1157_v45  ;;  %2616 = vmatpush3.msra.mxu0 %v1247_v7  ;;  %v3466_v45 = vld [vmem:[%s3709_s12 + $0x10] sm:$0xff] }
  0x78   : > { %2620 = vmatprep.subr.mxu1 %v2935_v3  ;;  %2639 = vmatprep.subr.mxu0 %v2935_v3 }
 0x11b   : > { %v817_v52 = vpop.f32.mrf.mxu1  ;;  %v975_v53 = vpop.f32.mrf.mxu0 }
 0x11d   : > { %v2545_v54 = vpop.f32.mrf.mxu1  ;;  %v2563_v55 = vpop.f32.mrf.mxu0 }
 0x11e   : > { %v3528_v54 = vld [vmem:[%s3744_s11 + $0x20] sm:$0xff]  ;;  %v3535_v55 = vld [vmem:[%s3744_s11 + $0x18] sm:$0xff] }
 0x121   : > { %v892_v56 = vpop.f32.mrf.mxu1 }
 0x122   : > { %v893_v57 = vadd.f32 %v892_v56, %v817_v52  ;;  %v3515_v52 = vld [vmem:[%s3744_s11 + $0x30] sm:$0xff] }
 0x123   : > { %v2554_v58 = vpop.f32.mrf.mxu1  ;;  %v3542_v56 = vld [vmem:[%s3744_s11 + $0x10] sm:$0xff] }
 0x124   : > { %v979_v60 = vadd.f32 %v975_v53, %v893_v57  ;;  %v3521_v53 = vld [vmem:[%s3744_s11 + $0x28] sm:$0xff]  ;;  %v3558_v58 = vld [vmem:[%s3744_s11] sm:$0xff] }
 0x125   : > { %v1143_v59 = vpop.f32.mrf.mxu0  ;;  %v3551_v57 = vld [vmem:[%s3744_s11 + $0x8] sm:$0xff] }
 0x127   : > { %v1059_v61 = vpop.f32.mrf.mxu1  ;;  %v2581_v62 = vpop.f32.mrf.mxu0 }
 0x128   : > { %v1063_v63 = vadd.f32 %v1059_v61, %v979_v60  ;;  %v3567_v61 = vld [vmem:[%s3745_s29] ss:$0 sm:$0xff]  ;;  %s2405_s29 = sld [smem:[#allocation3 + $0x1]] }
 0x129   : > { %v2572_v1 = vpop.f32.mrf.mxu1 }
 0x12a   : > { %v1147_v2 = vadd.f32 %v1143_v59, %v1063_v63 }
 0x12c   : > { %v1155_v4 = vadd.f32 %v2381_v0, %v1147_v2  ;;  %v2408_v2 = vld [vmem:[%s3707_s10 + $0x28] sm:$0x1] }
 0x12e   : > { %v1156_v5 = vmax.f32 %v1155_v4, 0.0  ;;  %v2407_v4 = vld [vmem:[%s3707_s10 + $0x20] sm:$0xff] }
 0x130   : > { %2599 = vmatmul.mubr.msk.f32.vlgmr.msra.gmra.mxu1 %vm1172_vm7, %v1156_v5  ;;  %v2406_v5 = vld [vmem:[%s3707_s10 + $0x18] sm:$0xff] }
 0x131   : > { %2636 = vmatprep.mubr.msk.f32.mxu1 %vm2936_vm1, %v2935_v3  ;;  %2621 = vmatpush3.msra.mxu1 %v3309_v8 }
 0x132   : > { %2622 = vmatprep.subr.mxu1 %v2935_v3 }
 0x133   : > { %2623 = vmatpush3.msra.mxu1 %v3314_v10 }
 0x134   : > { %2624 = vmatprep.subr.mxu1 %v2935_v3 }
 0x135   : > { %2625 = vmatpush3.msra.mxu1 %v3321_v11 }
 0x136   : > { %2626 = vmatprep.subr.mxu1 %v2935_v3 }
 0x137   : > { %2627 = vmatpush3.msra.mxu1 %v3328_v12 }
 0x138   : > { %2628 = vmatprep.subr.mxu1 %v2935_v3 }
 0x139   : > { %2629 = vmatpush3.msra.mxu1 %v3335_v13 }
 0x13a   : > { %2630 = vmatprep.subr.mxu1 %v2935_v3 }
 0x13b   : > { %2631 = vmatpush3.msra.mxu1 %v3342_v14 }
 0x13c   : > { %2632 = vmatprep.subr.mxu1 %v2935_v3 }
 0x13d   : > { %2633 = vmatpush3.msra.mxu1 %v3408_v28 }
 0x13e   : > { %2634 = vmatprep.subr.mxu1 %v2935_v3 }
 0x13f   : > { %2635 = vmatpush3.msra.mxu1 %v3415_v29 }
 0x140   : > { %2657 = vmatprep.subr.mxu1 %v2935_v3 }
 0x1f0   : > { %v1242_v16 = vpop.f32.mrf.mxu1 }
 0x1f1   : > { %v1243_v17 = vadd.f32 %v2382_v15, %v1242_v16 }
 0x1f2   : > { %v2600_v18 = vpop.f32.mrf.mxu1 }
 0x1f3   : > { %v1246_v19 = vmax.f32 %v1243_v17, 0.0 }
 0x1f5   : > { %2618 = vmatmul.mubr.msk.f32.vlgmr.msra.gmra.mxu0 %vm1172_vm7, %v1246_v19 }
 0x1f6   : > { %2640 = vmatpush3.msk.msra.mxu0 %vm747_vm0, %v2394_v20  ;;  %2645 = vmatprep.mubr.msk.f32.mxu0 %vm2936_vm1, %v2935_v3 }
 0x1f7   : > { %2641 = vmatprep.subr.mxu0 %v2935_v3 }
 0x1f8   : > { %2642 = vmatpush3.msra.mxu0 %v2393_v21 }
 0x1f9   : > { %2643 = vmatprep.subr.mxu0 %v2935_v3 }
 0x1fa   : > { %2644 = vmatpush3.msra.mxu0 %v2392_v22 }
 0x1fb   : > { %2648 = vmatprep.subr.mxu0 %v2935_v3  ;;  %2646 = vmatmul.mubr.msk.f32.vlgmr.msra.gmra.mxu0 %vm744_vm3, %v3367_v23 }
 0x1fc   : > { %2649 = vmatpush3.msk.msra.mxu0 %vm747_vm0, %v3373_v24  ;;  %2654 = vmatprep.mubr.msk.f32.mxu0 %vm2936_vm1, %v2935_v3 }
 0x1fd   : > { %2650 = vmatprep.subr.mxu0 %v2935_v3 }
 0x1fe   : > { %2651 = vmatpush3.msra.mxu0 %v3381_v25 }
 0x1ff   : > { %2652 = vmatprep.subr.mxu0 %v2935_v3 }
 0x200   : > { %2653 = vmatpush3.msra.mxu0 %v3391_v26 }
 0x201   : > { %2655 = vmatmul.mubr.msk.f32.vlgmr.msra.gmra.mxu0 %vm744_vm3, %v3396_v27  ;;  %2676 = vmatprep.subr.mxu0 %v2935_v3 }
 0x202   : > { %2692 = vmatprep.mubr.msk.f32.mxu0 %vm2936_vm1, %v2935_v3  ;;  %2677 = vmatpush3.msra.mxu0 %v3509_v51 }
 0x203   : > { %2678 = vmatprep.subr.mxu0 %v2935_v3 }
 0x204   : > { %2679 = vmatpush3.msra.mxu0 %v3515_v52 }
 0x205   : > { %2680 = vmatprep.subr.mxu0 %v2935_v3 }
 0x206   : > { %2681 = vmatpush3.msra.mxu0 %v3521_v53 }
 0x207   : > { %2682 = vmatprep.subr.mxu0 %v2935_v3 }
 0x208   : > { %2683 = vmatpush3.msra.mxu0 %v3528_v54 }
 0x209   : > { %2684 = vmatprep.subr.mxu0 %v2935_v3 }
 0x20a   : > { %2685 = vmatpush3.msra.mxu0 %v3535_v55 }
 0x20b   : > { %2686 = vmatprep.subr.mxu0 %v2935_v3 }
 0x20c   : > { %2687 = vmatpush3.msra.mxu0 %v3542_v56 }
 0x20d   : > { %2688 = vmatprep.subr.mxu0 %v2935_v3 }
 0x20e   : > { %2689 = vmatpush3.msra.mxu0 %v3551_v57 }
 0x20f   : > { %2690 = vmatprep.subr.mxu0 %v2935_v3 }
 0x210   : > { %2691 = vmatpush3.msra.mxu0 %v3558_v58 }
 0x211   : > { %2714 = vmatprep.subr.mxu0 %v2935_v3 }
 0x2b5   : > { %v1331_v31 = vpop.f32.mrf.mxu0 }
 0x2b6   : > { %v1332_v32 = vadd.f32 %v2384_v30, %v1331_v31 }
 0x2b7   : > { %v2619_v33 = vpop.f32.mrf.mxu0 }
 0x2b8   : > { %v1335_v34 = vmax.f32 %v1332_v32, 0.0 }
 0x2ba   : > { %2637 = vmatmul.mubr.msk.f32.vlgmr.msra.gmra.mxu1 %vm1172_vm7, %v1335_v34 }
 0x2bb   : > { %2658 = vmatpush3.msra.mxu1 %v3425_v35  ;;  %v1502_v37 = vpop.f32.mrf.mxu0  ;;  %2673 = vmatprep.mubr.msk.f32.mxu1 %vm2936_vm1, %v2935_v3 }
 0x2bc   : > { %2659 = vmatprep.subr.mxu1 %v2935_v3 }
 0x2bd   : > { %2660 = vmatpush3.msra.mxu1 %v3431_v36  ;;  %v2647_v39 = vpop.f32.mrf.mxu0 }
 0x2be   : > { %2661 = vmatprep.subr.mxu1 %v2935_v3 }
 0x2bf   : > { %2662 = vmatpush3.msra.mxu1 %v3440_v38 }
 0x2c0   : > { %2663 = vmatprep.subr.mxu1 %v2935_v3 }
 0x2c1   : > { %v1578_v42 = vpop.f32.mrf.mxu0  ;;  %2664 = vmatpush3.msra.mxu1 %v3447_v40 }
 0x2c2   : > { %v1579_v44 = vadd.f32 %v1578_v42, %v1502_v37  ;;  %2665 = vmatprep.subr.mxu1 %v2935_v3 }
 0x2c3   : > { %v2656_v46 = vpop.f32.mrf.mxu0  ;;  %2666 = vmatpush3.msra.mxu1 %v3454_v41 }
 0x2c4   : > { %v1589_v47 = vadd.f32 %v3459_v43, %v1579_v44  ;;  %2667 = vmatprep.subr.mxu1 %v2935_v3  ;;  %v2223_v44 = vstv %s2417_s19 }
 0x2c5   : > { %2668 = vmatpush3.msra.mxu1 %v3466_v45 }
 0x2c6   : > { %2669 = vmatprep.subr.mxu1 %v2935_v3  ;;  %v1590_v50 = vmax.f32 %v1589_v47, 0.0 }
 0x2c7   : > { %2670 = vmatpush3.msra.mxu1 %v3474_v48 }
 0x2c8   : > { %2671 = vmatprep.subr.mxu1 %v2935_v3 }
 0x2c9   : > { %2672 = vmatpush3.msra.mxu1 %v3481_v49 }
 0x2ca   : > { %2674 = vmatmul.mubr.msk.f32.vlgmr.msra.gmra.mxu1 %vm1172_vm7, %v1590_v50  ;;  %2695 = vmatprep.subr.mxu1 %v2935_v3 }
 0x2cb   : > { %2696 = vmatpush3.msra.mxu1 %v3309_v8  ;;  %2711 = vmatprep.mubr.msk.f32.mxu1 %vm2936_vm1, %v2935_v3 }
 0x2cc   : > { %2697 = vmatprep.subr.mxu1 %v2935_v3 }
 0x2cd   : > { %2698 = vmatpush3.msra.mxu1 %v3314_v10 }
 0x2ce   : > { %2699 = vmatprep.subr.mxu1 %v2935_v3 }
 0x2cf   : > { %2700 = vmatpush3.msra.mxu1 %v3321_v11 }
 0x2d0   : > { %2701 = vmatprep.subr.mxu1 %v2935_v3 }
 0x2d1   : > { %2702 = vmatpush3.msra.mxu1 %v3328_v12 }
 0x2d2   : > { %2703 = vmatprep.subr.mxu1 %v2935_v3 }
 0x2d3   : > { %2704 = vmatpush3.msra.mxu1 %v3335_v13 }
 0x2d4   : > { %2705 = vmatprep.subr.mxu1 %v2935_v3 }
 0x2d5   : > { %2706 = vmatpush3.msra.mxu1 %v3342_v14 }
 0x2d6   : > { %2707 = vmatprep.subr.mxu1 %v2935_v3 }
 0x2d7   : > { %2708 = vmatpush3.msra.mxu1 %v3408_v28 }
 0x2d8   : > { %2709 = vmatprep.subr.mxu1 %v2935_v3 }
 0x2d9   : > { %2710 = vmatpush3.msra.mxu1 %v3415_v29 }
 0x2da   : > { %2751 = vmatprep.subr.mxu1 %v2935_v3 }
 0x37a   : > { %v3562_v59 = vpop.f32.mrf.mxu1 }
 0x37c   : > { %v2638_v60 = vpop.f32.mrf.mxu1 }
 0x38a   : > { %v1675_v62 = vpop.f32.mrf.mxu1 }
 0x38b   : > { %v1676_v63 = vadd.f32 %v3567_v61, %v1675_v62 }
 0x38c   : > { %v2675_v0 = vpop.f32.mrf.mxu1 }
 0x38d   : > { %v1679_v1 = vmax.f32 %v1676_v63, 0.0 }
 0x38f   : > { %2693 = vmatmul.mubr.msk.f32.vlgmr.msra.gmra.mxu0 %vm1172_vm7, %v1679_v1 }
 0x390   : > { %2715 = vmatpush3.msk.msra.mxu0 %vm747_vm0, %v3373_v24  ;;  %2720 = vmatprep.mubr.msk.f32.mxu0 %vm2936_vm1, %v2935_v3 }
 0x391   : > { %2716 = vmatprep.subr.mxu0 %v2935_v3 }
 0x392   : > { %2717 = vmatpush3.msra.mxu0 %v3381_v25  ;;  %v1844_v25 = vstv %s2405_s29 }
 0x393   : > { %2718 = vmatprep.subr.mxu0 %v2935_v3 }
 0x394   : > { %2719 = vmatpush3.msra.mxu0 %v3391_v26 }
 0x395   : > { %2721 = vmatmul.mubr.msk.f32.vlgmr.msra.gmra.mxu0 %vm744_vm3, %v3367_v23  ;;  %2723 = vmatprep.subr.mxu0 %v2935_v3 }
 0x396   : > { %2724 = vmatpush3.msk.msra.mxu0 %vm747_vm0, %v2408_v2  ;;  %2729 = vmatprep.mubr.msk.f32.mxu0 %vm2936_vm1, %v2935_v3 }
 0x397   : > { %2725 = vmatprep.subr.mxu0 %v2935_v3 }
 0x398   : > { %2726 = vmatpush3.msra.mxu0 %v2407_v4 }
 0x399   : > { %2727 = vmatprep.subr.mxu0 %v2935_v3 }
 0x39a   : > { %2728 = vmatpush3.msra.mxu0 %v2406_v5 }
 0x39b   : > { %2730 = vmatmul.mubr.msk.f32.vlgmr.msra.gmra.mxu0 %vm744_vm3, %v3396_v27  ;;  %2732 = vmatprep.subr.mxu0 %v2935_v3 }
 0x39c   : > { %2733 = vmatpush3.msra.mxu0 %v3425_v35  ;;  %2748 = vmatprep.mubr.msk.f32.mxu0 %vm2936_vm1, %v2935_v3 }
 0x39d   : > { %2734 = vmatprep.subr.mxu0 %v2935_v3 }
 0x39e   : > { %2735 = vmatpush3.msra.mxu0 %v3431_v36 }
 0x39f   : > { %2736 = vmatprep.subr.mxu0 %v2935_v3 }
 0x3a0   : > { %2737 = vmatpush3.msra.mxu0 %v3440_v38 }
 0x3a1   : > { %2738 = vmatprep.subr.mxu0 %v2935_v3 }
 0x3a2   : > { %2739 = vmatpush3.msra.mxu0 %v3447_v40  ;;  %v2219_v40 = vstv %s2416_s13 }
 0x3a3   : > { %2740 = vmatprep.subr.mxu0 %v2935_v3 }
 0x3a4   : > { %2741 = vmatpush3.msra.mxu0 %v3454_v41 }
 0x3a5   : > { %2742 = vmatprep.subr.mxu0 %v2935_v3 }
 0x3a6   : > { %2743 = vmatpush3.msra.mxu0 %v3466_v45 }
 0x3a7   : > { %2744 = vmatprep.subr.mxu0 %v2935_v3 }
 0x3a8   : > { %2745 = vmatpush3.msra.mxu0 %v3474_v48 }
 0x3a9   : > { %2746 = vmatprep.subr.mxu0 %v2935_v3 }
 0x3aa   : > { %2747 = vmatpush3.msra.mxu0 %v3481_v49 }
 0x3ab   : > { %2770 = vmatprep.subr.mxu0 %v2935_v3 }
 0x44f   : > { %v1764_v7 = vpop.f32.mrf.mxu0 }
 0x450   : > { %v1765_v15 = vadd.f32 %v3620_v6, %v1764_v7 }
 0x451   : > { %v2694_v16 = vpop.f32.mrf.mxu0 }
 0x452   : > { %v1768_v17 = vmax.f32 %v1765_v15, 0.0 }
 0x454   : > { %2712 = vmatmul.mubr.msk.f32.vlgmr.msra.gmra.mxu1 %vm1172_vm7, %v1768_v17 }
 0x455   : > { %v1917_v18 = vpop.f32.mrf.mxu0  ;;  %2752 = vmatpush3.msra.mxu1 %v3509_v51  ;;  %2767 = vmatprep.mubr.msk.f32.mxu1 %vm2936_vm1, %v2935_v3 }
 0x456   : > { %2753 = vmatprep.subr.mxu1 %v2935_v3 }
 0x457   : > { %v2722_v19 = vpop.f32.mrf.mxu0  ;;  %2754 = vmatpush3.msra.mxu1 %v3515_v52 }
 0x458   : > { %2755 = vmatprep.subr.mxu1 %v2935_v3 }
 0x459   : > { %2756 = vmatpush3.msra.mxu1 %v3521_v53 }
 0x45a   : > { %2757 = vmatprep.subr.mxu1 %v2935_v3 }
 0x45b   : > { %v1990_v20 = vpop.f32.mrf.mxu0  ;;  %2758 = vmatpush3.msra.mxu1 %v3528_v54 }
 0x45c   : > { %v1991_v21 = vadd.f32 %v1990_v20, %v1917_v18  ;;  %2759 = vmatprep.subr.mxu1 %v2935_v3 }
 0x45d   : > { %v2731_v22 = vpop.f32.mrf.mxu0  ;;  %2760 = vmatpush3.msra.mxu1 %v3535_v55 }
 0x45e   : > { %v1994_v23 = vadd.f32 %v3459_v43, %v1991_v21  ;;  %2761 = vmatprep.subr.mxu1 %v2935_v3 }
 0x45f   : > { %2762 = vmatpush3.msra.mxu1 %v3542_v56 }
 0x460   : > { %v1995_v24 = vmax.f32 %v1994_v23, 0.0  ;;  %2763 = vmatprep.subr.mxu1 %v2935_v3 }
 0x461   : > { %2764 = vmatpush3.msra.mxu1 %v3551_v57 }
 0x462   : > { %2749 = vmatmul.mubr.msk.f32.vlgmr.msra.gmra.mxu0 %vm1172_vm7, %v1995_v24  ;;  %2765 = vmatprep.subr.mxu1 %v2935_v3 }
 0x463   : > { %2766 = vmatpush3.msra.mxu1 %v3558_v58  ;;  %2771 = vmatpush3.msra.mxu0 %v3309_v8  ;;  %v2386_v8 = vld [vmem:[%s3747_s18] ss:$0 sm:$0xff] }
 0x464   : > { %2772 = vmatprep.subr.mxu0 %v2935_v3  ;;  %2786 = vmatprep.mubr.msk.f32.mxu0 %vm2936_vm1, %v2935_v3 }
 0x465   : > { %2773 = vmatpush3.msra.mxu0 %v3314_v10  ;;  %v1412_v10 = vadd.f32 %v2386_v8, %v3562_v59 }
 0x466   : > { %2774 = vmatprep.subr.mxu0 %v2935_v3 }
 0x467   : > { %2775 = vmatpush3.msra.mxu0 %v3321_v11 }
 0x468   : > { %2776 = vmatprep.subr.mxu0 %v2935_v3 }
 0x469   : > { %2777 = vmatpush3.msra.mxu0 %v3328_v12  ;;  %v1415_v12 = vmax.f32 %v1412_v10, 0.0 }
 0x46a   : > { %2778 = vmatprep.subr.mxu0 %v2935_v3 }
 0x46b   : > { %2779 = vmatpush3.msra.mxu0 %v3335_v13 }
 0x46c   : > { %2780 = vmatprep.subr.mxu0 %v2935_v3 }
 0x46d   : > { %2781 = vmatpush3.msra.mxu0 %v3342_v14  ;;  %v1417_v14 = vstv %s1416_s3 }
 0x46e   : > { %2782 = vmatprep.subr.mxu0 %v2935_v3 }
 0x46f   : > { %2783 = vmatpush3.msra.mxu0 %v3408_v28  ;;  %v1418_v28 = vmul.f32 %v1417_v14, %v1415_v12 }
 0x470   : > { %2784 = vmatprep.subr.mxu0 %v2935_v3 }
 0x471   : > { %2785 = vmatpush3.msra.mxu0 %v3415_v29 }
 0x514   : > { %v1838_v11 = vpop.f32.mrf.mxu1 }
 0x515   : > { %v1839_v13 = vadd.f32 %v2386_v8, %v1838_v11 }
 0x516   : > { %v2713_v26 = vpop.f32.mrf.mxu1 }
 0x517   : > { %v1842_v27 = vmax.f32 %v1839_v13, 0.0 }
 0x519   : > { %v1845_v3 = vmul.f32 %v1844_v25, %v1842_v27 }
 0x51b   : > { %v1846_v29 = vadd.f32 %v1845_v3, %v1418_v28 }
 0x522   : > { %v2065_v30 = vpop.f32.mrf.mxu0 }
 0x523   : > { %v2066_v31 = vadd.f32 %v3567_v61, %v2065_v30 }
 0x524   : > { %v2750_v32 = vpop.f32.mrf.mxu0 }
 0x525   : > { %v2069_v33 = vmax.f32 %v2066_v31, 0.0 }
 0x527   : > { %2768 = vmatmul.mubr.msk.f32.vlgmr.msra.gmra.mxu1 %vm1172_vm7, %v2069_v33 }
 0x5e7   : > { %v2139_v34 = vpop.f32.mrf.mxu1 }
 0x5e8   : > { %v2140_v35 = vadd.f32 %v3620_v6, %v2139_v34 }
 0x5e9   : > { %v2769_v36 = vpop.f32.mrf.mxu1 }
 0x5ea   : > { %v2143_v37 = vmax.f32 %v2140_v35, 0.0 }
 0x5ec   : > { %2787 = vmatmul.mubr.msk.f32.vlgmr.msra.gmra.mxu0 %vm1172_vm7, %v2143_v37 }
 0x6ac   : > { %v2213_v38 = vpop.f32.mrf.mxu0 }
 0x6ad   : > { %v2214_v39 = vadd.f32 %v2386_v8, %v2213_v38 }
 0x6ae   : > { %v2788_v41 = vpop.f32.mrf.mxu0 }
 0x6af   : > { %v2217_v42 = vmax.f32 %v2214_v39, 0.0 }
 0x6b1   : > { %v2220_v43 = vmul.f32 %v2219_v40, %v2217_v42 }
 0x6b3   : > { %v2221_v45 = vadd.f32 %v2220_v43, %v1846_v29 }
 0x6b5   : > { %v2224_v46 = vadd.f32 %v2223_v44, %v2221_v45 }
 0x6b7   : > { %v2225_v47 = vadd.f32 %v3173_v9, %v2224_v46 }
 0x6b9   : > { %2226 = vst.msk [vmem:[%s699_s23] sm:$0xff] %vm744_vm3, %v2225_v47 }
 0x6ba PF: > { %s30_s2 = sadd.s32 1, %s2932_s2   ;;  %s3749_s3 = sld [smem:[#allocation6_spill]] }
 0x6bb   : > { %p27_p9 = scmp.ge.s32.totalorder %s30_s2, 10   ;;  %s3750_s26 = sld [smem:[#allocation7_spill]] }
 0x6bc   : > { %s3751_s0 = smov %s2912_s30  ;;  %s3752_s30 = smov %s3110_s14 }
 0x6bd   : > { %s3753_s20 = smov %s2924_s1  ;;  %s3754_s21 = smov %s2928_s22 }
 0x6be   :  { %29 = sbr.rel (!%p27_p9) target bundleno = 16 (0x10), region = 186 }
 0x6c0   : > { %s3755_s1 = smov %s3749_s3 }
 0x6c1   : > { %s3756_s22 = smov %s3750_s26 }
 0x6c3   :  { %2254 = vsyncpa [#allocation4], 1 }
 0x6c4   :  { %2256 = vsyncpa [#allocation4 + $0x1], 1 }

</bundles_post_ra>
